<compile_context>
chip_gen: v5e
topology: v5e:2x2
jax: 0.10.0
libtpu: 0.0.40
codegen_flags: <defaults>
</compile_context>

<pallas_src>
import functools

import jax
import jax.numpy as jnp
from jax.experimental import pallas as pl
from jax.experimental.pallas import tpu as pltpu

# ---------------- model hyper-parameters (small, deterministic) ----------------
OUTPUT_DIM = 64    # vocab size V
EMB_DIM    = 32    # E
HID_DIM    = 32    # H
N_LAYERS   = 2     # L
DROPOUT    = 0.1   # eval mode -> identity (no RNG applied)
BATCH      = 8     # B
V_PAD      = ((OUTPUT_DIM + 127) // 128) * 128   # lane-dense logits width
TIME_CHUNK = 8     # decode steps fused per grid step (raise for long decodes)

MXU_PRECISION = jax.lax.Precision.HIGHEST        # explicit f32 matmul semantics


def _decoder_kernel(tok_ref,        # (T_pad*B,) int32 flat tokens, SMEM scalar prefetch
                    state0_ref,     # (B, 2*L*H)  packed initial [h | c]
                    emb_ref,        # (V, E)      embedding table (VMEM-resident)
                    wih0_ref,       # (E, 4H)     layer-0 input weights (transposed)
                    wih_rest_ref,   # (max(L-1,1), H, 4H) input weights, layers 1..L-1
                    whh_ref,        # (L, H, 4H)  recurrent weights (transposed)
                    b_ref,          # (L, 1, 4H)  b_ih + b_hh per layer
                    wout_ref,       # (H, Vp)     fc_out weight (padded, transposed)
                    bout_ref,       # (1, Vp)     fc_out bias (padded)
                    pred_ref,       # (TS, B, Vp) per-chunk logits output block
                    state_ref,      # (B, 2*L*H)  packed final state output
                    slab_ref,       # (B, 2*L*H)  VMEM scratch: lane-dense state carry
                    *, total_steps):
    chunk = pl.program_id(0)
    ts, B, _ = pred_ref.shape
    L, H, _ = whh_ref.shape
    V, _ = emb_ref.shape

    @pl.when(chunk == 0)
    def _init():
        slab_ref[...] = state0_ref[...]

    # ---- chunk-invariant loads / iotas (hoisted out of the time loop) ----
    emb_tab = emb_ref[...]
    w_ih = [wih0_ref[...]] + [wih_rest_ref[l] for l in range(L - 1)]
    w_hh = [whh_ref[l] for l in range(L)]
    bias = [b_ref[l] for l in range(L)]
    w_out = wout_ref[...]
    b_out = bout_ref[...]

    row_iota = jax.lax.broadcasted_iota(jnp.int32, (B, V), 0)
    col_iota = jax.lax.broadcasted_iota(jnp.int32, (B, V), 1)
    lane4h = jax.lax.broadcasted_iota(jnp.int32, (B, 4 * H), 1)
    is_g = jnp.logical_and(lane4h >= 2 * H, lane4h < 3 * H)   # tanh (g) gate region

    # dynamic trip count: last chunk may be partial (T not a multiple of TS)
    steps = jnp.minimum(ts, total_steps - chunk * ts)

    def step_body(s, carry):
        base = (chunk * ts + s) * B

        # ---- embedding lookup as a one-hot MXU matmul ----
        tok_mat = jnp.full((B, V), tok_ref[base], jnp.int32)
        for b in range(1, B):
            tok_mat = jnp.where(row_iota == b, tok_ref[base + b], tok_mat)
        one_hot = (tok_mat == col_iota).astype(jnp.float32)          # (B, V)
        x = jnp.dot(one_hot, emb_tab, preferred_element_type=jnp.float32,
                    precision=MXU_PRECISION)                          # (B, E)
        # TODO(synk): dropout on the embedded input only applies in training mode;
        #             eval = identity (training parity needs pltpu.prng_* masking).

        for l in range(L):                       # static unroll over layers
            h_prev = slab_ref[:, l * H:(l + 1) * H]                   # (B, H)
            c_prev = slab_ref[:, (L + l) * H:(L + l + 1) * H]         # (B, H)

            # gates = x @ W_ih + h @ W_hh + b   (no lane-axis concat)
            gates = (jnp.dot(x, w_ih[l], preferred_element_type=jnp.float32,
                             precision=MXU_PRECISION)
                     + jnp.dot(h_prev, w_hh[l], preferred_element_type=jnp.float32,
                               precision=MXU_PRECISION)
                     + bias[l])                                       # (B, 4H)

            # full-width EUP activations; lane mask selects the tanh (g) region
            act = jnp.where(is_g, jnp.tanh(gates), jax.nn.sigmoid(gates))
            i_g = act[:, 0 * H:1 * H]
            f_g = act[:, 1 * H:2 * H]
            g_g = act[:, 2 * H:3 * H]
            o_g = act[:, 3 * H:4 * H]

            c_new = f_g * c_prev + i_g * g_g
            h_new = o_g * jnp.tanh(c_new)

            slab_ref[:, l * H:(l + 1) * H] = h_new
            slab_ref[:, (L + l) * H:(L + l + 1) * H] = c_new
            x = h_new

        # output projection, V padded to 128 lanes -> unmasked stores
        pred_ref[s] = (jnp.dot(x, w_out, preferred_element_type=jnp.float32,
                               precision=MXU_PRECISION) + b_out)
        return carry

    jax.lax.fori_loop(0, steps, step_body, 0)

    # packed state written back once, at the final chunk only
    @pl.when(chunk == pl.num_programs(0) - 1)
    def _final():
        state_ref[...] = slab_ref[...]


def decoder_decode(tokens, hidden, cell, params, *, time_chunk=TIME_CHUNK):
    """Run T decode steps in one pallas_call (time-chunked grid, in-kernel loop).

    tokens : (T, B) int32 token ids (teacher-forced decoder inputs)
    hidden, cell : (L, B, H) initial state
    returns (preds (T, B, V), hidden (L, B, H), cell (L, B, H))
    """
    tokens = jnp.asarray(tokens, jnp.int32)
    T, B = tokens.shape
    L, _, H = hidden.shape
    V, E = params["embedding"].shape
    Vp = params["w_out_p"].shape[-1]
    S = 2 * L * H

    n_chunks = pl.cdiv(T, time_chunk)
    t_pad = n_chunks * time_chunk

    # flat 1D token layout for SMEM (avoids 128-word last-dim padding)
    tok_flat = jnp.zeros((t_pad * B,), jnp.int32).at[: T * B].set(tokens.reshape(-1))

    # pack initial state into a lane-dense (B, 2*L*H) slab (layout plumbing)
    state0 = jnp.concatenate(
        [hidden.transpose(1, 0, 2).reshape(B, L * H),
         cell.transpose(1, 0, 2).reshape(B, L * H)], axis=-1).astype(jnp.float32)

    kernel = functools.partial(_decoder_kernel, total_steps=T)

    grid_spec = pltpu.PrefetchScalarGridSpec(
        num_scalar_prefetch=1,
        grid=(n_chunks,),
        in_specs=[
            pl.BlockSpec((B, S), lambda c, tok: (0, 0)),               # packed init state
            pl.BlockSpec((V, E), lambda c, tok: (0, 0)),               # embedding table
            pl.BlockSpec((E, 4 * H), lambda c, tok: (0, 0)),           # W_ih layer 0
            pl.BlockSpec((max(L - 1, 1), H, 4 * H),
                         lambda c, tok: (0, 0, 0)),                    # W_ih layers 1..
            pl.BlockSpec((L, H, 4 * H), lambda c, tok: (0, 0, 0)),     # W_hh
            pl.BlockSpec((L, 1, 4 * H), lambda c, tok: (0, 0, 0)),     # fused bias
            pl.BlockSpec((H, Vp), lambda c, tok: (0, 0)),              # fc_out W (padded)
            pl.BlockSpec((1, Vp), lambda c, tok: (0, 0)),              # fc_out b (padded)
        ],
        out_specs=(
            pl.BlockSpec((time_chunk, B, Vp), lambda c, tok: (c, 0, 0)),  # logits chunk
            pl.BlockSpec((B, S), lambda c, tok: (0, 0)),                  # final state
        ),
        scratch_shapes=[
            pltpu.VMEM((B, S), jnp.float32),   # lane-dense [h | c] carry slab
        ],
    )

    out_shapes = (
        jax.ShapeDtypeStruct((t_pad, B, Vp), jnp.float32),
        jax.ShapeDtypeStruct((B, S), jnp.float32),
    )

    # NOTE(v7x): for multiple independent streams/beams, add a leading "parallel"
    # grid axis over streams to engage the second TensorCore (single stream here).
    pred_p, state = pl.pallas_call(
        kernel,
        out_shape=out_shapes,
        grid_spec=grid_spec,
        compiler_params=pltpu.CompilerParams(
            dimension_semantics=("arbitrary",)),     # time axis carries recurrent state
    )(tok_flat, state0, params["embedding"], params["w_ih0"], params["w_ih_rest"],
      params["w_hh"], params["b_gates"], params["w_out_p"], params["b_out_p"])

    preds = pred_p[:T, :, :V]
    h_new = state[:, : L * H].reshape(B, L, H).transpose(1, 0, 2)
    c_new = state[:, L * H:].reshape(B, L, H).transpose(1, 0, 2)
    return preds, h_new, c_new


def decoder_forward(input_tokens, hidden, cell, params):
    """Matches Decoder.forward exactly: one step; input (B,) ints, state (L,B,H)."""
    preds, h_new, c_new = decoder_decode(input_tokens[None, :], hidden, cell, params)
    return preds[0], h_new, c_new


def make_params(key):
    """Deterministic init mimicking PyTorch shapes; LSTM gate order (i, f, g, o)."""
    ks = jax.random.split(key, 16)
    scale = 1.0 / jnp.sqrt(HID_DIM)
    u = lambda k, shp: jax.random.uniform(k, shp, jnp.float32, -scale, scale)

    emb = jax.random.normal(ks[0], (OUTPUT_DIM, EMB_DIM), jnp.float32)

    w_ih0 = u(ks[1], (4 * HID_DIM, EMB_DIM)).T                        # (E, 4H)
    if N_LAYERS > 1:
        w_ih_rest = jnp.stack([u(ks[2 + l], (4 * HID_DIM, HID_DIM)).T
                               for l in range(N_LAYERS - 1)])         # (L-1, H, 4H)
    else:
        w_ih_rest = jnp.zeros((1, HID_DIM, 4 * HID_DIM), jnp.float32)  # dummy
    w_hh = jnp.stack([u(ks[5 + l], (4 * HID_DIM, HID_DIM)).T
                      for l in range(N_LAYERS)])                      # (L, H, 4H)

    b_ih = jnp.stack([u(ks[8 + l], (4 * HID_DIM,)) for l in range(N_LAYERS)])
    b_hh = jnp.stack([u(ks[10 + l], (4 * HID_DIM,)) for l in range(N_LAYERS)])
    b_gates = (b_ih + b_hh)[:, None, :]                               # (L, 1, 4H)

    w_out = u(ks[12], (OUTPUT_DIM, HID_DIM))
    b_out = u(ks[13], (OUTPUT_DIM,))
    w_out_p = jnp.zeros((HID_DIM, V_PAD), jnp.float32).at[:, :OUTPUT_DIM].set(w_out.T)
    b_out_p = jnp.zeros((1, V_PAD), jnp.float32).at[:, :OUTPUT_DIM].set(b_out[None, :])

    return {
        "embedding": emb,            # (V, E)
        "w_ih0": w_ih0,              # (E, 4H)
        "w_ih_rest": w_ih_rest,      # (max(L-1,1), H, 4H)
        "w_hh": w_hh,                # (L, H, 4H)
        "b_gates": b_gates,          # (L, 1, 4H)
        "w_out_p": w_out_p,          # (H, Vp)
        "b_out_p": b_out_p,          # (1, Vp)
    }


def _reference_forward(tokens_1d, hidden, cell, params):
    """Pure-JAX single-step reference (f32, HIGHEST precision), for correctness."""
    x = jnp.take(params["embedding"], tokens_1d, axis=0)              # (B, E)
    H = HID_DIM
    h_out, c_out = [], []
    for l in range(N_LAYERS):
        w_ih = params["w_ih0"] if l == 0 else params["w_ih_rest"][l - 1]
        gates = (jnp.dot(x, w_ih, precision=MXU_PRECISION)
                 + jnp.dot(hidden[l], params["w_hh"][l], precision=MXU_PRECISION)
                 + params["b_gates"][l])
        i = jax.nn.sigmoid(gates[:, :H])
        f = jax.nn.sigmoid(gates[:, H:2 * H])
        g = jnp.tanh(gates[:, 2 * H:3 * H])
        o = jax.nn.sigmoid(gates[:, 3 * H:])
        c_new = f * cell[l] + i * g
        h_new = o * jnp.tanh(c_new)
        h_out.append(h_new)
        c_out.append(c_new)
        x = h_new
    pred = (jnp.dot(x, params["w_out_p"][:, :OUTPUT_DIM], precision=MXU_PRECISION)
            + params["b_out_p"][0, :OUTPUT_DIM])
    return pred, jnp.stack(h_out), jnp.stack(c_out)


if __name__ == "__main__":
    key = jax.random.PRNGKey(0)
    k_par, k_tok, k_h, k_c, k_seq = jax.random.split(key, 5)

    params = make_params(k_par)
    input_tokens = jax.random.randint(k_tok, (BATCH,), 0, OUTPUT_DIM)
    hidden = jax.random.normal(k_h, (N_LAYERS, BATCH, HID_DIM), jnp.float32)
    cell = jax.random.normal(k_c, (N_LAYERS, BATCH, HID_DIM), jnp.float32)

    # ---- single step: exact Decoder.forward semantics (partial time chunk T=1) ----
    pred, h_new, c_new = decoder_forward(input_tokens, hidden, cell, params)
    jax.block_until_ready((pred, h_new, c_new))

    pred_r, h_r, c_r = _reference_forward(input_tokens, hidden, cell, params)
    assert jnp.allclose(pred, pred_r, atol=1e-4, rtol=1e-4)
    assert jnp.allclose(h_new, h_r, atol=1e-4, rtol=1e-4)
    assert jnp.allclose(c_new, c_r, atol=1e-4, rtol=1e-4)

    # ---- fused multi-step decode: 2 time chunks, state carried in VMEM scratch ----
    T = 16
    token_seq = jax.random.randint(k_seq, (T, BATCH), 0, OUTPUT_DIM)
    preds_T, h_T, c_T = decoder_decode(token_seq, hidden, cell, params)
    jax.block_until_ready((preds_T, h_T, c_T))

    h_ref, c_ref = hidden, cell
    preds_ref = []
    for t in range(T):
        p_t, h_ref, c_ref = _reference_forward(token_seq[t], h_ref, c_ref, params)
        preds_ref.append(p_t)
    preds_ref = jnp.stack(preds_ref)
    assert jnp.allclose(preds_T, preds_ref, atol=1e-4, rtol=1e-4)
    assert jnp.allclose(h_T, h_ref, atol=1e-4, rtol=1e-4)
    assert jnp.allclose(c_T, c_ref, atol=1e-4, rtol=1e-4)

    print("KERNEL_OK")
</pallas_src>

<mosaic_0001>
module attributes {stable_mosaic.version = 11 : i64} {
  func.func @_decoder_kernel(%arg0: i32, %arg1: memref<64xi32, #tpu.memory_space<smem>>, %arg2: memref<8x128xf32, #tpu.memory_space<vmem>>, %arg3: memref<64x32xf32, #tpu.memory_space<vmem>>, %arg4: memref<32x128xf32, #tpu.memory_space<vmem>>, %arg5: memref<1x32x128xf32, #tpu.memory_space<vmem>>, %arg6: memref<2x32x128xf32, #tpu.memory_space<vmem>>, %arg7: memref<2x1x128xf32, #tpu.memory_space<vmem>>, %arg8: memref<32x128xf32, #tpu.memory_space<vmem>>, %arg9: memref<1x128xf32, #tpu.memory_space<vmem>>, %arg10: memref<8x8x128xf32, #tpu.memory_space<vmem>>, %arg11: memref<8x128xf32, #tpu.memory_space<vmem>>, %arg12: memref<8x128xf32, #tpu.memory_space<vmem>>) attributes {dimension_semantics = [#tpu.dimension_semantics<arbitrary>], iteration_bounds = array<i64: 1>, scalar_prefetch = 1 : i64, scratch_operands = 1 : i64, tpu.core_type = #tpu.core_type<tc>, window_params = [{pipeline_mode = #tpu.pipeline_mode<synchronous>, transform_indices = @transform_0, window_bounds = array<i64: 8, 128>}, {pipeline_mode = #tpu.pipeline_mode<synchronous>, transform_indices = @transform_1, window_bounds = array<i64: 64, 32>}, {pipeline_mode = #tpu.pipeline_mode<synchronous>, transform_indices = @transform_2, window_bounds = array<i64: 32, 128>}, {pipeline_mode = #tpu.pipeline_mode<synchronous>, transform_indices = @transform_3, window_bounds = array<i64: 1, 32, 128>}, {pipeline_mode = #tpu.pipeline_mode<synchronous>, transform_indices = @transform_4, window_bounds = array<i64: 2, 32, 128>}, {pipeline_mode = #tpu.pipeline_mode<synchronous>, transform_indices = @transform_5, window_bounds = array<i64: 2, 1, 128>}, {pipeline_mode = #tpu.pipeline_mode<synchronous>, transform_indices = @transform_6, window_bounds = array<i64: 32, 128>}, {pipeline_mode = #tpu.pipeline_mode<synchronous>, transform_indices = @transform_7, window_bounds = array<i64: 1, 128>}, {transform_indices = @transform_8, window_bounds = array<i64: 8, 8, 128>}, {pipeline_mode = #tpu.pipeline_mode<synchronous>, transform_indices = @transform_9, window_bounds = array<i64: 8, 128>}]} {
    %c0_i32 = arith.constant 0 : i32
    %0 = arith.cmpi eq, %arg0, %c0_i32 : i32
    %1 = arith.extui %0 : i1 to i32
    %c0_i32_0 = arith.constant 0 : i32
    %2 = arith.cmpi ne, %1, %c0_i32_0 : i32
    scf.if %2 {
      %c0_28 = arith.constant 0 : index
      %c0_29 = arith.constant 0 : index
      %33 = vector.load %arg2[%c0_28, %c0_29] : memref<8x128xf32, #tpu.memory_space<vmem>>, vector<8x128xf32>
      %c0_30 = arith.constant 0 : index
      %c0_31 = arith.constant 0 : index
      %34 = vector.load %arg12[%c0_30, %c0_31] : memref<8x128xf32, #tpu.memory_space<vmem>>, vector<8x128xf32>
      tpu.vector_store %arg12[%c0_30, %c0_31], %33 {strides = array<i32>} : memref<8x128xf32, #tpu.memory_space<vmem>>, vector<8x128xf32>,
    } else {
    }
    %c0 = arith.constant 0 : index
    %c0_1 = arith.constant 0 : index
    %3 = vector.load %arg3[%c0, %c0_1] : memref<64x32xf32, #tpu.memory_space<vmem>>, vector<64x32xf32>
    %c0_2 = arith.constant 0 : index
    %c0_3 = arith.constant 0 : index
    %4 = vector.load %arg4[%c0_2, %c0_3] : memref<32x128xf32, #tpu.memory_space<vmem>>, vector<32x128xf32>
    %c0_4 = arith.constant 0 : index
    %c0_5 = arith.constant 0 : index
    %c0_6 = arith.constant 0 : index
    %5 = vector.load %arg5[%c0_4, %c0_5, %c0_6] : memref<1x32x128xf32, #tpu.memory_space<vmem>>, vector<1x32x128xf32>
    %6 = vector.shape_cast %5 : vector<1x32x128xf32> to vector<32x128xf32>
    %c0_7 = arith.constant 0 : index
    %c0_8 = arith.constant 0 : index
    %c0_9 = arith.constant 0 : index
    %7 = vector.load %arg6[%c0_7, %c0_8, %c0_9] : memref<2x32x128xf32, #tpu.memory_space<vmem>>, vector<1x32x128xf32>
    %8 = vector.shape_cast %7 : vector<1x32x128xf32> to vector<32x128xf32>
    %c1 = arith.constant 1 : index
    %c0_10 = arith.constant 0 : index
    %c0_11 = arith.constant 0 : index
    %9 = vector.load %arg6[%c1, %c0_10, %c0_11] : memref<2x32x128xf32, #tpu.memory_space<vmem>>, vector<1x32x128xf32>
    %10 = vector.shape_cast %9 : vector<1x32x128xf32> to vector<32x128xf32>
    %c0_12 = arith.constant 0 : index
    %c0_13 = arith.constant 0 : index
    %c0_14 = arith.constant 0 : index
    %11 = vector.load %arg7[%c0_12, %c0_13, %c0_14] : memref<2x1x128xf32, #tpu.memory_space<vmem>>, vector<1x1x128xf32>
    %12 = vector.shape_cast %11 : vector<1x1x128xf32> to vector<1x128xf32>
    %c1_15 = arith.constant 1 : index
    %c0_16 = arith.constant 0 : index
    %c0_17 = arith.constant 0 : index
    %13 = vector.load %arg7[%c1_15, %c0_16, %c0_17] : memref<2x1x128xf32, #tpu.memory_space<vmem>>, vector<1x1x128xf32>
    %14 = vector.shape_cast %13 : vector<1x1x128xf32> to vector<1x128xf32>
    %c0_18 = arith.constant 0 : index
    %c0_19 = arith.constant 0 : index
    %15 = vector.load %arg8[%c0_18, %c0_19] : memref<32x128xf32, #tpu.memory_space<vmem>>, vector<32x128xf32>
    %c0_20 = arith.constant 0 : index
    %c0_21 = arith.constant 0 : index
    %16 = vector.load %arg9[%c0_20, %c0_21] : memref<1x128xf32, #tpu.memory_space<vmem>>, vector<1x128xf32>
    %17 = tpu.iota {dimensions = array<i32: 0>} : vector<8x64xi32>
    %18 = tpu.iota {dimensions = array<i32: 1>} : vector<8x64xi32>
    %19 = tpu.iota {dimensions = array<i32: 1>} : vector<8x128xi32>
    %c64_i32 = arith.constant 64 : i32
    %20 = vector.broadcast %c64_i32 : i32 to vector<8x128xi32>
    %21 = arith.cmpi sge, %19, %20 : vector<8x128xi32>
    %c96_i32 = arith.constant 96 : i32
    %22 = vector.broadcast %c96_i32 : i32 to vector<8x128xi32>
    %23 = arith.cmpi slt, %19, %22 : vector<8x128xi32>
    %24 = arith.andi %21, %23 : vector<8x128xi1>
    %c8_i32 = arith.constant 8 : i32
    %25 = arith.muli %arg0, %c8_i32 : i32
    %c1_i32 = arith.constant 1 : i32
    %26 = arith.subi %c1_i32, %25 : i32
    %c8_i32_22 = arith.constant 8 : i32
    %27 = arith.minsi %c8_i32_22, %26 : i32
    %c0_i32_23 = arith.constant 0 : i32
    %c0_i32_24 = arith.constant 0 : i32
    %28 = arith.subi %27, %c0_i32_24 : i32
    %29 = arith.addi %c0_i32_24, %28 : i32
    %c1_i32_25 = arith.constant 1 : i32
    scf.for %arg13 = %c0_i32_24 to %29 step %c1_i32_25  : i32 {
      %c8_i32_28 = arith.constant 8 : i32
      %33 = arith.muli %arg0, %c8_i32_28 : i32
      %34 = arith.addi %33, %arg13 : i32
      %c8_i32_29 = arith.constant 8 : i32
      %35 = arith.muli %34, %c8_i32_29 : i32
      %36 = arith.index_cast %35 : i32 to index
      %37 = memref.load %arg1[%36] : memref<64xi32, #tpu.memory_space<smem>>
      %38 = vector.broadcast %37 : i32 to vector<8x64xi32>
      %c1_i32_30 = arith.constant 1 : i32
      %39 = vector.broadcast %c1_i32_30 : i32 to vector<8x64xi32>
      %40 = arith.cmpi eq, %17, %39 : vector<8x64xi32>
      %c1_i32_31 = arith.constant 1 : i32
      %41 = arith.addi %35, %c1_i32_31 : i32
      %42 = arith.index_cast %41 : i32 to index
      %43 = memref.load %arg1[%42] : memref<64xi32, #tpu.memory_space<smem>>
      %44 = vector.broadcast %43 : i32 to vector<8x64xi32>
      %45 = arith.select %40, %44, %38 : vector<8x64xi1>, vector<8x64xi32>
      %c2_i32 = arith.constant 2 : i32
      %46 = vector.broadcast %c2_i32 : i32 to vector<8x64xi32>
      %47 = arith.cmpi eq, %17, %46 : vector<8x64xi32>
      %c2_i32_32 = arith.constant 2 : i32
      %48 = arith.addi %35, %c2_i32_32 : i32
      %49 = arith.index_cast %48 : i32 to index
      %50 = memref.load %arg1[%49] : memref<64xi32, #tpu.memory_space<smem>>
      %51 = vector.broadcast %50 : i32 to vector<8x64xi32>
      %52 = arith.select %47, %51, %45 : vector<8x64xi1>, vector<8x64xi32>
      %c3_i32 = arith.constant 3 : i32
      %53 = vector.broadcast %c3_i32 : i32 to vector<8x64xi32>
      %54 = arith.cmpi eq, %17, %53 : vector<8x64xi32>
      %c3_i32_33 = arith.constant 3 : i32
      %55 = arith.addi %35, %c3_i32_33 : i32
      %56 = arith.index_cast %55 : i32 to index
      %57 = memref.load %arg1[%56] : memref<64xi32, #tpu.memory_space<smem>>
      %58 = vector.broadcast %57 : i32 to vector<8x64xi32>
      %59 = arith.select %54, %58, %52 : vector<8x64xi1>, vector<8x64xi32>
      %c4_i32 = arith.constant 4 : i32
      %60 = vector.broadcast %c4_i32 : i32 to vector<8x64xi32>
      %61 = arith.cmpi eq, %17, %60 : vector<8x64xi32>
      %c4_i32_34 = arith.constant 4 : i32
      %62 = arith.addi %35, %c4_i32_34 : i32
      %63 = arith.index_cast %62 : i32 to index
      %64 = memref.load %arg1[%63] : memref<64xi32, #tpu.memory_space<smem>>
      %65 = vector.broadcast %64 : i32 to vector<8x64xi32>
      %66 = arith.select %61, %65, %59 : vector<8x64xi1>, vector<8x64xi32>
      %c5_i32 = arith.constant 5 : i32
      %67 = vector.broadcast %c5_i32 : i32 to vector<8x64xi32>
      %68 = arith.cmpi eq, %17, %67 : vector<8x64xi32>
      %c5_i32_35 = arith.constant 5 : i32
      %69 = arith.addi %35, %c5_i32_35 : i32
      %70 = arith.index_cast %69 : i32 to index
      %71 = memref.load %arg1[%70] : memref<64xi32, #tpu.memory_space<smem>>
      %72 = vector.broadcast %71 : i32 to vector<8x64xi32>
      %73 = arith.select %68, %72, %66 : vector<8x64xi1>, vector<8x64xi32>
      %c6_i32 = arith.constant 6 : i32
      %74 = vector.broadcast %c6_i32 : i32 to vector<8x64xi32>
      %75 = arith.cmpi eq, %17, %74 : vector<8x64xi32>
      %c6_i32_36 = arith.constant 6 : i32
      %76 = arith.addi %35, %c6_i32_36 : i32
      %77 = arith.index_cast %76 : i32 to index
      %78 = memref.load %arg1[%77] : memref<64xi32, #tpu.memory_space<smem>>
      %79 = vector.broadcast %78 : i32 to vector<8x64xi32>
      %80 = arith.select %75, %79, %73 : vector<8x64xi1>, vector<8x64xi32>
      %c7_i32 = arith.constant 7 : i32
      %81 = vector.broadcast %c7_i32 : i32 to vector<8x64xi32>
      %82 = arith.cmpi eq, %17, %81 : vector<8x64xi32>
      %c7_i32_37 = arith.constant 7 : i32
      %83 = arith.addi %35, %c7_i32_37 : i32
      %84 = arith.index_cast %83 : i32 to index
      %85 = memref.load %arg1[%84] : memref<64xi32, #tpu.memory_space<smem>>
      %86 = vector.broadcast %85 : i32 to vector<8x64xi32>
      %87 = arith.select %82, %86, %80 : vector<8x64xi1>, vector<8x64xi32>
      %88 = arith.cmpi eq, %87, %18 : vector<8x64xi32>
      %89 = arith.extui %88 : vector<8x64xi1> to vector<8x64xi32>
      %90 = arith.sitofp %89 : vector<8x64xi32> to vector<8x64xf32>
      %cst = arith.constant dense<0.000000e+00> : vector<8x32xf32>
      %91 = tpu.matmul %90, %3, %cst {dimension_numbers = #tpu.dot_dimension_numbers<[1], [0], [0], [1], [0, 0, 1, 1], [], []>, precision = #tpu.contract_precision<fp32>} : vector<8x64xf32>, vector<64x32xf32>, vector<8x32xf32> -> vector<8x32xf32>
      %c0_38 = arith.constant 0 : index
      %c0_39 = arith.constant 0 : index
      %92 = vector.load %arg12[%c0_38, %c0_39] : memref<8x128xf32, #tpu.memory_space<vmem>>, vector<8x32xf32>
      %c0_40 = arith.constant 0 : index
      %c64 = arith.constant 64 : index
      %93 = vector.load %arg12[%c0_40, %c64] : memref<8x128xf32, #tpu.memory_space<vmem>>, vector<8x32xf32>
      %cst_41 = arith.constant dense<0.000000e+00> : vector<8x128xf32>
      %94 = tpu.matmul %91, %4, %cst_41 {dimension_numbers = #tpu.dot_dimension_numbers<[1], [0], [0], [1], [0, 0, 1, 1], [], []>, precision = #tpu.contract_precision<fp32>} : vector<8x32xf32>, vector<32x128xf32>, vector<8x128xf32> -> vector<8x128xf32>
      %cst_42 = arith.constant dense<0.000000e+00> : vector<8x128xf32>
      %95 = tpu.matmul %92, %8, %cst_42 {dimension_numbers = #tpu.dot_dimension_numbers<[1], [0], [0], [1], [0, 0, 1, 1], [], []>, precision = #tpu.contract_precision<fp32>} : vector<8x32xf32>, vector<32x128xf32>, vector<8x128xf32> -> vector<8x128xf32>
      %96 = arith.addf %94, %95 : vector<8x128xf32>
      %97 = vector.broadcast %12 : vector<1x128xf32> to vector<8x128xf32>
      %98 = arith.addf %96, %97 : vector<8x128xf32>
      %99 = math.tanh %98 : vector<8x128xf32>
      %100 = arith.negf %98 : vector<8x128xf32>
      %101 = math.exp %100 : vector<8x128xf32>
      %cst_43 = arith.constant 1.000000e+00 : f32
      %102 = vector.broadcast %cst_43 : f32 to vector<8x128xf32>
      %103 = arith.addf %102, %101 : vector<8x128xf32>
      %104 = arith.divf %102, %103 : vector<8x128xf32>
      %105 = arith.select %24, %99, %104 : vector<8x128xi1>, vector<8x128xf32>
      %106 = vector.extract_strided_slice %105 {offsets = [0, 0], sizes = [8, 32], strides = [1, 1]} : vector<8x128xf32> to vector<8x32xf32>
      %107 = vector.extract_strided_slice %105 {offsets = [0, 32], sizes = [8, 32], strides = [1, 1]} : vector<8x128xf32> to vector<8x32xf32>
      %108 = vector.extract_strided_slice %105 {offsets = [0, 64], sizes = [8, 32], strides = [1, 1]} : vector<8x128xf32> to vector<8x32xf32>
      %109 = vector.extract_strided_slice %105 {offsets = [0, 96], sizes = [8, 32], strides = [1, 1]} : vector<8x128xf32> to vector<8x32xf32>
      %110 = arith.mulf %107, %93 : vector<8x32xf32>
      %111 = arith.mulf %106, %108 : vector<8x32xf32>
      %112 = arith.addf %110, %111 : vector<8x32xf32>
      %113 = math.tanh %112 : vector<8x32xf32>
      %114 = arith.mulf %109, %113 : vector<8x32xf32>
      %c0_44 = arith.constant 0 : index
      %c0_45 = arith.constant 0 : index
      %115 = vector.load %arg12[%c0_44, %c0_45] : memref<8x128xf32, #tpu.memory_space<vmem>>, vector<8x32xf32>
      tpu.vector_store %arg12[%c0_44, %c0_45], %114 {strides = array<i32>} : memref<8x128xf32, #tpu.memory_space<vmem>>, vector<8x32xf32>,
      %c0_46 = arith.constant 0 : index
      %c64_47 = arith.constant 64 : index
      %116 = vector.load %arg12[%c0_46, %c64_47] : memref<8x128xf32, #tpu.memory_space<vmem>>, vector<8x32xf32>
      tpu.vector_store %arg12[%c0_46, %c64_47], %112 {strides = array<i32>} : memref<8x128xf32, #tpu.memory_space<vmem>>, vector<8x32xf32>,
      %c0_48 = arith.constant 0 : index
      %c32 = arith.constant 32 : index
      %117 = vector.load %arg12[%c0_48, %c32] : memref<8x128xf32, #tpu.memory_space<vmem>>, vector<8x32xf32>
      %c0_49 = arith.constant 0 : index
      %c96 = arith.constant 96 : index
      %118 = vector.load %arg12[%c0_49, %c96] : memref<8x128xf32, #tpu.memory_space<vmem>>, vector<8x32xf32>
      %cst_50 = arith.constant dense<0.000000e+00> : vector<8x128xf32>
      %119 = tpu.matmul %114, %6, %cst_50 {dimension_numbers = #tpu.dot_dimension_numbers<[1], [0], [0], [1], [0, 0, 1, 1], [], []>, precision = #tpu.contract_precision<fp32>} : vector<8x32xf32>, vector<32x128xf32>, vector<8x128xf32> -> vector<8x128xf32>
      %cst_51 = arith.constant dense<0.000000e+00> : vector<8x128xf32>
      %120 = tpu.matmul %117, %10, %cst_51 {dimension_numbers = #tpu.dot_dimension_numbers<[1], [0], [0], [1], [0, 0, 1, 1], [], []>, precision = #tpu.contract_precision<fp32>} : vector<8x32xf32>, vector<32x128xf32>, vector<8x128xf32> -> vector<8x128xf32>
      %121 = arith.addf %119, %120 : vector<8x128xf32>
      %122 = vector.broadcast %14 : vector<1x128xf32> to vector<8x128xf32>
      %123 = arith.addf %121, %122 : vector<8x128xf32>
      %124 = math.tanh %123 : vector<8x128xf32>
      %125 = arith.negf %123 : vector<8x128xf32>
      %126 = math.exp %125 : vector<8x128xf32>
      %cst_52 = arith.constant 1.000000e+00 : f32
      %127 = vector.broadcast %cst_52 : f32 to vector<8x128xf32>
      %128 = arith.addf %127, %126 : vector<8x128xf32>
      %129 = arith.divf %127, %128 : vector<8x128xf32>
      %130 = arith.select %24, %124, %129 : vector<8x128xi1>, vector<8x128xf32>
      %131 = vector.extract_strided_slice %130 {offsets = [0, 0], sizes = [8, 32], strides = [1, 1]} : vector<8x128xf32> to vector<8x32xf32>
      %132 = vector.extract_strided_slice %130 {offsets = [0, 32], sizes = [8, 32], strides = [1, 1]} : vector<8x128xf32> to vector<8x32xf32>
      %133 = vector.extract_strided_slice %130 {offsets = [0, 64], sizes = [8, 32], strides = [1, 1]} : vector<8x128xf32> to vector<8x32xf32>
      %134 = vector.extract_strided_slice %130 {offsets = [0, 96], sizes = [8, 32], strides = [1, 1]} : vector<8x128xf32> to vector<8x32xf32>
      %135 = arith.mulf %132, %118 : vector<8x32xf32>
      %136 = arith.mulf %131, %133 : vector<8x32xf32>
      %137 = arith.addf %135, %136 : vector<8x32xf32>
      %138 = math.tanh %137 : vector<8x32xf32>
      %139 = arith.mulf %134, %138 : vector<8x32xf32>
      %c0_53 = arith.constant 0 : index
      %c32_54 = arith.constant 32 : index
      %140 = vector.load %arg12[%c0_53, %c32_54] : memref<8x128xf32, #tpu.memory_space<vmem>>, vector<8x32xf32>
      tpu.vector_store %arg12[%c0_53, %c32_54], %139 {strides = array<i32>} : memref<8x128xf32, #tpu.memory_space<vmem>>, vector<8x32xf32>,
      %c0_55 = arith.constant 0 : index
      %c96_56 = arith.constant 96 : index
      %141 = vector.load %arg12[%c0_55, %c96_56] : memref<8x128xf32, #tpu.memory_space<vmem>>, vector<8x32xf32>
      tpu.vector_store %arg12[%c0_55, %c96_56], %137 {strides = array<i32>} : memref<8x128xf32, #tpu.memory_space<vmem>>, vector<8x32xf32>,
      %cst_57 = arith.constant dense<0.000000e+00> : vector<8x128xf32>
      %142 = tpu.matmul %139, %15, %cst_57 {dimension_numbers = #tpu.dot_dimension_numbers<[1], [0], [0], [1], [0, 0, 1, 1], [], []>, precision = #tpu.contract_precision<fp32>} : vector<8x32xf32>, vector<32x128xf32>, vector<8x128xf32> -> vector<8x128xf32>
      %143 = vector.broadcast %16 : vector<1x128xf32> to vector<8x128xf32>
      %144 = arith.addf %142, %143 : vector<8x128xf32>
      %145 = arith.index_cast %arg13 : i32 to index
      %c0_58 = arith.constant 0 : index
      %c0_59 = arith.constant 0 : index
      %146 = vector.load %arg10[%145, %c0_58, %c0_59] : memref<8x8x128xf32, #tpu.memory_space<vmem>>, vector<1x8x128xf32>
      %147 = vector.shape_cast %146 : vector<1x8x128xf32> to vector<8x128xf32>
      %148 = vector.shape_cast %144 : vector<8x128xf32> to vector<1x8x128xf32>
      tpu.vector_store %arg10[%145, %c0_58, %c0_59], %148 {strides = array<i32>} : memref<8x8x128xf32, #tpu.memory_space<vmem>>, vector<1x8x128xf32>,
    }
    %c0_i32_26 = arith.constant 0 : i32
    %30 = arith.cmpi eq, %arg0, %c0_i32_26 : i32
    %31 = arith.extui %30 : i1 to i32
    %c0_i32_27 = arith.constant 0 : i32
    %32 = arith.cmpi ne, %31, %c0_i32_27 : i32
    scf.if %32 {
      %c0_28 = arith.constant 0 : index
      %c0_29 = arith.constant 0 : index
      %33 = vector.load %arg12[%c0_28, %c0_29] : memref<8x128xf32, #tpu.memory_space<vmem>>, vector<8x128xf32>
      %c0_30 = arith.constant 0 : index
      %c0_31 = arith.constant 0 : index
      %34 = vector.load %arg11[%c0_30, %c0_31] : memref<8x128xf32, #tpu.memory_space<vmem>>, vector<8x128xf32>
      tpu.vector_store %arg11[%c0_30, %c0_31], %33 {strides = array<i32>} : memref<8x128xf32, #tpu.memory_space<vmem>>, vector<8x128xf32>,
    } else {
    }
    return
  }
  func.func @transform_0(%arg0: i32, %arg1: memref<64xi32, #tpu.memory_space<smem>>) -> (i32, i32) {
    %c0_i32 = arith.constant 0 : i32
    %c0_i32_0 = arith.constant 0 : i32
    %c0_i32_1 = arith.constant 0 : i32
    return %c0_i32, %c0_i32_0 : i32, i32
  }
  func.func @transform_1(%arg0: i32, %arg1: memref<64xi32, #tpu.memory_space<smem>>) -> (i32, i32) {
    %c0_i32 = arith.constant 0 : i32
    %c0_i32_0 = arith.constant 0 : i32
    %c0_i32_1 = arith.constant 0 : i32
    return %c0_i32, %c0_i32_0 : i32, i32
  }
  func.func @transform_2(%arg0: i32, %arg1: memref<64xi32, #tpu.memory_space<smem>>) -> (i32, i32) {
    %c0_i32 = arith.constant 0 : i32
    %c0_i32_0 = arith.constant 0 : i32
    %c0_i32_1 = arith.constant 0 : i32
    return %c0_i32, %c0_i32_0 : i32, i32
  }
  func.func @transform_3(%arg0: i32, %arg1: memref<64xi32, #tpu.memory_space<smem>>) -> (i32, i32, i32) {
    %c0_i32 = arith.constant 0 : i32
    %c0_i32_0 = arith.constant 0 : i32
    %c0_i32_1 = arith.constant 0 : i32
    %c0_i32_2 = arith.constant 0 : i32
    return %c0_i32, %c0_i32_0, %c0_i32_1 : i32, i32, i32
  }
  func.func @transform_4(%arg0: i32, %arg1: memref<64xi32, #tpu.memory_space<smem>>) -> (i32, i32, i32) {
    %c0_i32 = arith.constant 0 : i32
    %c0_i32_0 = arith.constant 0 : i32
    %c0_i32_1 = arith.constant 0 : i32
    %c0_i32_2 = arith.constant 0 : i32
    return %c0_i32, %c0_i32_0, %c0_i32_1 : i32, i32, i32
  }
  func.func @transform_5(%arg0: i32, %arg1: memref<64xi32, #tpu.memory_space<smem>>) -> (i32, i32, i32) {
    %c0_i32 = arith.constant 0 : i32
    %c0_i32_0 = arith.constant 0 : i32
    %c0_i32_1 = arith.constant 0 : i32
    %c0_i32_2 = arith.constant 0 : i32
    return %c0_i32, %c0_i32_0, %c0_i32_1 : i32, i32, i32
  }
  func.func @transform_6(%arg0: i32, %arg1: memref<64xi32, #tpu.memory_space<smem>>) -> (i32, i32) {
    %c0_i32 = arith.constant 0 : i32
    %c0_i32_0 = arith.constant 0 : i32
    %c0_i32_1 = arith.constant 0 : i32
    return %c0_i32, %c0_i32_0 : i32, i32
  }
  func.func @transform_7(%arg0: i32, %arg1: memref<64xi32, #tpu.memory_space<smem>>) -> (i32, i32) {
    %c0_i32 = arith.constant 0 : i32
    %c0_i32_0 = arith.constant 0 : i32
    %c0_i32_1 = arith.constant 0 : i32
    return %c0_i32, %c0_i32_0 : i32, i32
  }
  func.func @transform_8(%arg0: i32, %arg1: memref<64xi32, #tpu.memory_space<smem>>) -> (i32, i32, i32) {
    %c0_i32 = arith.constant 0 : i32
    %c0_i32_0 = arith.constant 0 : i32
    %c0_i32_1 = arith.constant 0 : i32
    return %arg0, %c0_i32, %c0_i32_0 : i32, i32, i32
  }
  func.func @transform_9(%arg0: i32, %arg1: memref<64xi32, #tpu.memory_space<smem>>) -> (i32, i32) {
    %c0_i32 = arith.constant 0 : i32
    %c0_i32_0 = arith.constant 0 : i32
    %c0_i32_1 = arith.constant 0 : i32
    return %c0_i32, %c0_i32_0 : i32, i32
  }
}

</mosaic_0001>

<bundles_post_ra>
// kernel: tpu_custom_call.1
= control target key start
LH: loop header
LB: loop body
LE: loop exit
PB: predicated region body
PF: predicated region fallthrough
CT: control target
= control target key end

     0   :  { %s1737_s16 = smov [#allocation4]   ;;  %s2281_s0 = inlined_call_operand.vmem [shape: s32[64], index: 0, kind: input, shape index: {}]   ;;  %s2282_s1 = inlined_call_operand.hbm [shape: f32[8,128], index: 1, kind: input, shape index: {}]   ;;  %s2283_s2 = inlined_call_operand.vmem [shape: f32[64,32], index: 2, kind: input, shape index: {}]   ;;  %s2284_s3 = inlined_call_operand.vmem [shape: f32[32,128], index: 3, kind: input, shape index: {}]   ;;  %s2285_s4 = inlined_call_operand.hbm [shape: f32[1,32,128], index: 4, kind: input, shape index: {}]   ;;  %s2286_s5 = inlined_call_operand.vmem [shape: f32[2,32,128], index: 5, kind: input, shape index: {}]   ;;  %s2287_s6 = inlined_call_operand.vmem [shape: f32[2,1,128], index: 6, kind: input, shape index: {}]   ;;  %s2288_s7 = inlined_call_operand.hbm [shape: f32[32,128], index: 7, kind: input, shape index: {}]   ;;  %s2289_s8 = inlined_call_operand.vmem [shape: f32[1,128], index: 8, kind: input, shape index: {}]   ;;  %s2290_s9 = inlined_call_operand.hbm [shape: f32[8,8,128], index: 9, kind: output, shape index: {0}]   ;;  %s2291_s10 = inlined_call_operand.hbm [shape: f32[8,128], index: 10, kind: output, shape index: {1}]  }
   0x1   :  { %s17_s15 = sshll.u32 %s2281_s0, 4  ;;  %s18_s15 = int_to_ptr.vmem [resolvable:$true] %s17_s15 }
   0x2   :  { %20 = dma.vmem_to_smem %s18_s15, 16, %s1737_s16, [#allocation3] }
   0x3   :  { %1723 = dma.done.wait [#allocation3], 16 }
   0x4   :  { %1724 = vsyncadd [#allocation3], 4294967280 }
   0x5   :  { %23 = sfence }
   0x6   :  { %24 = vsyncpa [#allocation6], 0 }
   0x7   :  { %25 = vsyncpa [#allocation9], 0 }
   0x8   :  { %26 = vsyncpa [#allocation7], 0  ;;  %s47_s19 = sshll.u32 %s2285_s4, 4  ;;  %s48_s19 = int_to_ptr.hbm [resolvable:$true] %s47_s19 }
   0x9   :  { %27 = vsyncpa [#allocation13], 0  ;;  %s1738_s20 = smov [#allocation8]   ;;  %s33_s23 = sshll.u32 %s2282_s1, 4  ;;  %s34_s23 = int_to_ptr.hbm [resolvable:$true] %s33_s23 }
   0xa   :  { %s49_s21 = sshll.u32 %s1738_s20, 4  ;;  %s1739_s24 = smov 128   ;;  %s50_s21 = int_to_ptr.vmem [resolvable:$true] %s49_s21 }
   0xb   :  { %s1740_s25 = smov 8   ;;  %s1741_s26 = smov [#allocation5]  }
   0xc   :  { %55 = dma.hbm_to_vmem [thread:$0]  %s48_s19, 512, %s50_s21, [#allocation9], %s1739_s24, %s1739_s24, %s1740_s25  }
   0xd   :  { %s35_s27 = sshll.u32 %s1741_s26, 4  ;;  %s64_s29 = sshll.u32 %s2288_s7, 4  ;;  %s36_s27 = int_to_ptr.vmem [resolvable:$true] %s35_s27  ;;  %s65_s29 = int_to_ptr.hbm [resolvable:$true] %s64_s29 }
   0xe   :  { %38 = dma.hbm_to_vmem [thread:$0]  %s34_s23, 128, %s36_s27, [#allocation6]  }
   0xf   :  { %s1742_s30 = smov [#allocation10]  }
  0x10   :  { %s66_s11 = sshll.u32 %s1742_s30, 4  ;;  %s67_s11 = int_to_ptr.vmem [resolvable:$true] %s66_s11 }
  0x11   :  { %72 = dma.hbm_to_vmem [thread:$0]  %s65_s29, 512, %s67_s11, [#allocation9], %s1739_s24, %s1739_s24, %s1740_s25  }
  0x12   :  { %1725 = dma.done.wait [#allocation6], 128  }
  0x13   :  { %1726 = vsyncadd [#allocation6], 4294967168 }
  0x14   :  { %1727 = dma.done.wait [#allocation9], 1024  }
  0x15   :  { %1728 = vsyncadd [#allocation9], 4294966272  ;;  %v126_v0 = vlaneseq  ;;  %v1835_v4 = vld [vmem:[%s2283_s2] sm:$0xff]  ;;  %v1840_v5 = vld [vmem:[%s2283_s2 + $0x8] sm:$0xff]  ;;  %s1963_s11 = smov 0  }
  0x16   :  { %2310 = vst [vmem:[#allocation21_spill] sm:$0xff] %v1835_v4  ;;  %v1845_v6 = vld [vmem:[%s2283_s2 + $0x10] sm:$0xff]  ;;  %v1850_v7 = vld [vmem:[%s2283_s2 + $0x18] sm:$0xff]  ;;  %v1855_v8 = vld [vmem:[%s2283_s2 + $0x20] sm:$0xff] }
  0x17   :  { %v1822_v1 = vshrl.u32 %v126_v0, 7  ;;  %v1824_v2 = vand.u32 127, %v126_v0  ;;  %2311 = vst [vmem:[#allocation22_spill] sm:$0xff] %v1840_v5  ;;  %v1860_v9 = vld [vmem:[%s2283_s2 + $0x28] sm:$0xff]  ;;  %v1865_v10 = vld [vmem:[%s2283_s2 + $0x30] sm:$0xff]  ;;  %v1870_v11 = vld [vmem:[%s2283_s2 + $0x38] sm:$0xff] }
  0x18   :  { %2312 = vst [vmem:[#allocation23_spill] sm:$0xff] %v1845_v6  ;;  %v1875_v12 = vld [vmem:[%s2284_s3] sm:$0xff]  ;;  %v1880_v13 = vld [vmem:[%s2284_s3 + $0x8] sm:$0xff]  ;;  %v1885_v14 = vld [vmem:[%s2284_s3 + $0x10] sm:$0xff] }
  0x19   :  { %2306 = vst [vmem:[#allocation19_spill] sm:$0xff] %v1822_v1  ;;  %vm130_vm0 = vcmp.ge.s32.totalorder %v1824_v2, 64  ;;  %vm131_vm1 = vcmp.lt.s32.totalorder %v1824_v2, 96  ;;  %v1890_v15 = vld [vmem:[%s2284_s3 + $0x18] sm:$0xff]  ;;  %v1892_v16 = vld [vmem:[#allocation8] sm:$0xff]  ;;  %v1896_v18 = vld [vmem:[#allocation8 + $0x10] sm:$0xff] }
  0x1a   :  { %2307 = vst [vmem:[#allocation20_spill] sm:$0xff] %v1824_v2  ;;  %vm1828_vm2 = vmand %vm130_vm0, %vm131_vm1  ;;  %v1894_v17 = vld [vmem:[#allocation8 + $0x8] sm:$0xff]  ;;  %v1898_v19 = vld [vmem:[#allocation8 + $0x18] sm:$0xff] }
  0x1b   :  { %2313 = vst [vmem:[#allocation24_spill] sm:$0xff] %v1850_v7  ;;  %v1903_v20 = vld [vmem:[%s2286_s5] sm:$0xff]  ;;  %v1908_v21 = vld [vmem:[%s2286_s5 + $0x8] sm:$0xff]  ;;  %v1913_v22 = vld [vmem:[%s2286_s5 + $0x10] sm:$0xff] }
  0x1c   :  { %v1918_v23 = vld [vmem:[%s2286_s5 + $0x18] sm:$0xff]  ;;  %v1923_v24 = vld [vmem:[%s2286_s5 + $0x20] sm:$0xff]  ;;  %v1928_v25 = vld [vmem:[%s2286_s5 + $0x28] sm:$0xff] }
  0x1d   :  { %v1933_v26 = vld [vmem:[%s2286_s5 + $0x30] sm:$0xff]  ;;  %v1938_v27 = vld [vmem:[%s2286_s5 + $0x38] sm:$0xff]  ;;  %v1943_v28 = vld [vmem:[%s2287_s6] sm:$0x1] }
  0x1e   :  { %v1948_v29 = vld [vmem:[%s2287_s6 + $0x1] sm:$0x1]  ;;  %v1950_v30 = vld [vmem:[#allocation10] sm:$0xff]  ;;  %v1952_v31 = vld [vmem:[#allocation10 + $0x8] sm:$0xff] }
  0x1f   :  { %v1954_v32 = vld [vmem:[#allocation10 + $0x10] sm:$0xff]  ;;  %v1956_v33 = vld [vmem:[#allocation10 + $0x18] sm:$0xff] }
  0x20   :  { %v1961_v34 = vld [vmem:[%s2289_s8] sm:$0x1]  ;;  %v91_v35 = vld [vmem:[#allocation5] sm:$0xff] }
  0x21   :  { %92 = vst [vmem:[#allocation2] sm:$0xff] %v91_v35 }
  0x22 LB: > { %v2314_v7 = vld [vmem:[#allocation24_spill] sm:$0xff]  ;;  %v2315_v6 = vld [vmem:[#allocation23_spill] sm:$0xff]  ;;  %v2316_v5 = vld [vmem:[#allocation22_spill] sm:$0xff]  ;;  %v1969_v36 = vand.u32 4294901760, %v1870_v11  ;;  %v1972_v37 = vand.u32 4294901760, %v1865_v10  ;;  %v1975_v38 = vand.u32 4294901760, %v1860_v9  ;;  %s1735_s11 = sphi %s1963_s11, %s140_s11  }
  0x23   : > { %v2317_v1 = vld [vmem:[#allocation19_spill] sm:$0xff]  ;;  %v2318_v4 = vld [vmem:[#allocation21_spill] sm:$0xff]  ;;  %v1978_v39 = vand.u32 4294901760, %v1855_v8  ;;  %v1981_v40 = vand.u32 4294901760, %v2314_v7  ;;  %v1984_v41 = vand.u32 4294901760, %v2315_v6  ;;  %v1987_v42 = vand.u32 4294901760, %v2316_v5 }
  0x24   : > { %v1990_v43 = vand.u32 4294901760, %v2318_v4  ;;  %198 = vmatpush.msra.mxu0 %v1969_v36  ;;  %v1995_v44 = vsub.f32 %v1870_v11, %v1969_v36  ;;  %v1999_v45 = vsub.f32 %v1865_v10, %v1972_v37  ;;  %330 = vmatpush.msra.mxu3 %v1969_v36  ;;  %v2004_v46 = vsub.f32 %v1860_v9, %v1975_v38  ;;  %s2007_s6 = sshll.u32 %s1735_s11, 3  ;;  %v2320_v2 = vld [vmem:[#allocation20_spill] sm:$0xff]  ;;  %s1744_s22 = smov 64  }
  0x25   : > { %v2011_v47 = vsub.f32 %v1855_v8, %v1978_v39  ;;  %v2015_v48 = vsub.f32 %v2314_v7, %v1981_v40  ;;  %v2019_v49 = vsub.f32 %v2315_v6, %v1984_v41  ;;  %v2023_v50 = vsub.f32 %v2316_v5, %v1987_v42  ;;  %s2026_s8 = sld [smem:[#allocation4 + %s2007_s6]]  ;;  %s148_s1 = sadd.s32 1, %s2007_s6 }
  0x26   : > { %200 = vmatpush.msra.mxu0 %v1972_v37  ;;  %v2299_v51 = vand.u32 4294901760, %v1995_v44  ;;  %293 = vmatpush.msra.mxu2 %v1995_v44  ;;  %v2296_v52 = vand.u32 4294901760, %v1999_v45  ;;  %v2292_v53 = vand.u32 4294901760, %v2004_v46  ;;  %v2036_v54 = vsub.f32 %v2318_v4, %v1990_v43  ;;  %s2038_s7 = sld [smem:[#allocation4 + %s148_s1]]  ;;  %s153_s2 = sadd.s32 2, %s2007_s6 }
  0x27   : > { %332 = vmatpush.msra.mxu3 %v1972_v37  ;;  %v2293_v55 = vand.u32 4294901760, %v2011_v47  ;;  %v2294_v56 = vand.u32 4294901760, %v2015_v48  ;;  %v2295_v57 = vand.u32 4294901760, %v2019_v49  ;;  %v2298_v58 = vand.u32 4294901760, %v2023_v50  ;;  %s2046_s12 = sld [smem:[#allocation4 + %s153_s2]]  ;;  %s158_s13 = sadd.s32 3, %s2007_s6 }
  0x28   : > { %v233_v59 = vsub.f32 %v1995_v44, %v2299_v51  ;;  %202 = vmatpush.msra.mxu0 %v1975_v38  ;;  %v239_v60 = vsub.f32 %v1999_v45, %v2296_v52  ;;  %296 = vmatpush.msra.mxu2 %v1999_v45  ;;  %v245_v61 = vsub.f32 %v2004_v46, %v2292_v53  ;;  %v2297_v62 = vand.u32 4294901760, %v2036_v54  ;;  %s2061_s14 = sld [smem:[#allocation4 + %s158_s13]]  ;;  %s163_s3 = sadd.s32 4, %s2007_s6 }
  0x29   : > { %v251_v63 = vsub.f32 %v2011_v47, %v2293_v55  ;;  %334 = vmatpush.msra.mxu3 %v1975_v38  ;;  %s2068_s15 = sld [smem:[#allocation4 + %s163_s3]]  ;;  %s168_s16 = sadd.s32 5, %s2007_s6  ;;  %v257_v53 = vsub.f32 %v2015_v48, %v2294_v56  ;;  %vm147_vm3 = vcmp.eq.s32.totalorder %v2317_v1, 1  ;;  %vm152_vm4 = vcmp.eq.s32.totalorder %v2317_v1, 2 }
  0x2a   : > { %v234_v0 = vand.u32 4294901760, %v233_v59  ;;  %v240_v35 = vand.u32 4294901760, %v239_v60  ;;  %204 = vmatpush.msra.mxu0 %v1978_v39  ;;  %299 = vmatpush.msra.mxu2 %v2004_v46  ;;  %s2077_s17 = sld [smem:[#allocation4 + %s168_s16]]  ;;  %s173_s18 = sadd.s32 6, %s2007_s6  ;;  %v246_v55 = vand.u32 4294901760, %v245_v61  ;;  %v2084_v59 = vsub.f32 %v2019_v49, %v2295_v57 }
  0x2b   : > { %336 = vmatpush.msra.mxu3 %v1978_v39  ;;  %v2089_v60 = vsub.f32 %v2023_v50, %v2298_v58  ;;  %v2094_v56 = vsub.f32 %v2036_v54, %v2297_v62  ;;  %s2096_s19 = sld [smem:[#allocation4 + %s173_s18]]  ;;  %s178_s20 = sadd.s32 7, %s2007_s6  ;;  %v252_v61 = vand.u32 4294901760, %v251_v63  ;;  %v146_v57 = vstv %s2026_s8 }
  0x2c   : > { %235 = vmatpush.msra.mxu1 %v234_v0  ;;  %206 = vmatpush.msra.mxu0 %v1981_v40  ;;  %v150_v52 = vstv %s2038_s7  ;;  %s2103_s21 = sld [smem:[#allocation4 + %s178_s20]]  ;;  %vm157_vm5 = vcmp.eq.s32.totalorder %v2317_v1, 3  ;;  %vm162_vm6 = vcmp.eq.s32.totalorder %v2317_v1, 4  ;;  %v258_v63 = vand.u32 4294901760, %v257_v53  ;;  %s1745_s0 = smov 96  }
  0x2d   : > { %302 = vmatpush.msra.mxu2 %v2011_v47  ;;  %338 = vmatpush.msra.mxu3 %v1981_v40  ;;  %v151_v62 = vsel %vm147_vm3, %v150_v52, %v146_v57  ;;  %v155_v58 = vstv %s2046_s12  ;;  %vm167_vm7 = vcmp.eq.s32.totalorder %v2317_v1, 5  ;;  %v264_v4 = vand.u32 4294901760, %v2084_v59  ;;  %s1746_s23 = smov 32   ;;  %s1488_s26 = scalar_lea.vmem [#allocation11], %s2007_s6 }
  0x2e   : > { %241 = vmatpush.msra.mxu1 %v240_v35  ;;  %208 = vmatpush.msra.mxu0 %v1984_v41  ;;  %v156_v0 = vsel %vm152_vm4, %v155_v58, %v151_v62  ;;  %v160_v51 = vstv %s2061_s14  ;;  %vm172_vm8 = vcmp.eq.s32.totalorder %v2317_v1, 6  ;;  %vm177_vm9 = vcmp.eq.s32.totalorder %v2317_v1, 7  ;;  %s140_s11 = sadd.s32 1, %s1735_s11  }
  0x2f   : > { %305 = vmatpush.msra.mxu2 %v2015_v48  ;;  %340 = vmatpush.msra.mxu3 %v1984_v41  ;;  %v161_v52 = vsel %vm157_vm5, %v160_v51, %v156_v0  ;;  %v165_v57 = vstv %s2068_s15  ;;  %v2124_v62 = vand.u32 4294901760, %v1918_v23  ;;  %v2130_v59 = vand.u32 4294901760, %v1913_v22  ;;  %p139_p0 = scmp.ge.s32.totalorder %s140_s11, 1 }
  0x30   : > { %247 = vmatpush.msra.mxu1 %v246_v55  ;;  %210 = vmatpush.msra.mxu0 %v1987_v42  ;;  %v166_v53 = vsel %vm162_vm6, %v165_v57, %v161_v52  ;;  %v170_v58 = vstv %s2077_s17  ;;  %v2133_v55 = vand.u32 4294901760, %v1908_v21  ;;  %v2319_v1 = vand.u32 4294901760, %v1995_v44  ;;  %s1501_s4 = sshll.u32 (%p139_p0), %s2290_s9, 4  ;;  %s1747_s29 = smov (%p139_p0), [#allocation11]   ;;  %s1502_s4 = int_to_ptr.hbm [resolvable:$true] %s1501_s4 }
  0x31   : > { %308 = vmatpush.msra.mxu2 %v2019_v49  ;;  %342 = vmatpush.msra.mxu3 %v1987_v42  ;;  %v171_v35 = vsel %vm167_vm7, %v170_v58, %v166_v53  ;;  %v175_v51 = vstv %s2096_s19  ;;  %v2139_v57 = vsub.f32 %v1918_v23, %v2124_v62  ;;  %vm185_vm10 = vcmask 523264   ;;  %s1499_s5 = sshll.u32 (%p139_p0), %s1747_s29, 4  ;;  %s1748_s30 = smov (%p139_p0), [#allocation12]   ;;  %s1500_s5 = int_to_ptr.vmem [resolvable:$true] %s1499_s5 }
  0x32   : > { %253 = vmatpush.msra.mxu1 %v252_v61  ;;  %212 = vmatpush.msra.mxu0 %v1990_v43  ;;  %v176_v0 = vsel %vm172_vm8, %v175_v51, %v171_v35  ;;  %v180_v52 = vstv %s2103_s21  ;;  %v2146_v58 = vsub.f32 %v1913_v22, %v2130_v59  ;;  %v2150_v61 = vsub.f32 %v1908_v21, %v2133_v55  ;;  %s1513_s6 = sshll.u32 (%p139_p0), %s1748_s30, 4  ;;  %s1515_s11 = sshll.u32 (%p139_p0), %s2291_s10, 4  ;;  %s1514_s6 = int_to_ptr.vmem [resolvable:$true] %s1513_s6  ;;  %s1516_s11 = int_to_ptr.hbm [resolvable:$true] %s1515_s11 }
  0x33   : > { %311 = vmatpush.msra.mxu2 %v2023_v50  ;;  %v181_v53 = vsel %vm177_vm9, %v180_v52, %v176_v0  ;;  %v270_v35 = vand.u32 4294901760, %v2089_v60  ;;  %344 = vmatpush.msra.mxu3 %v1990_v43  ;;  %v2321_v44 = vand.u32 4294901760, %v1999_v45  ;;  %v1743_v51 = vmov 0.0  }
  0x34   : > { %363 = vmatpush.msrb.mxu0 %v2319_v1  ;;  %259 = vmatpush.msra.mxu1 %v258_v63  ;;  %vm182_vm11 = vcmp.eq.s32.totalorder %v181_v53, %v2320_v2  ;;  %v474_v1 = vand.u32 4294901760, %v2139_v57  ;;  %v480_v52 = vand.u32 4294901760, %v2146_v58  ;;  %v486_v5 = vand.u32 4294901760, %v2150_v61 }
  0x35   : > { %314 = vmatpush.msra.mxu2 %v2036_v54  ;;  %v1544_v0 = vsel %vm182_vm11, 1.0, %v1743_v51  ;;  %v276_v60 = vand.u32 4294901760, %v2094_v56  ;;  %v2322_v45 = vand.u32 4294901760, %v2004_v46  ;;  %v2323_v6 = vand.u32 4294901760, %v2011_v47 }
  0x36   : > { %367 = vmatpush.msrb.mxu0 %v2321_v44  ;;  %265 = vmatpush.msra.mxu1 %v264_v4  ;;  %v187_v63 = vsel %vm185_vm10, %v1544_v0, 0  ;;  %v475_v53 = vsub.f32 %v2139_v57, %v474_v1  ;;  %v481_v44 = vsub.f32 %v2146_v58, %v480_v52  ;;  %v487_v4 = vsub.f32 %v2150_v61, %v486_v5 }
  0x37   : > { %444 = vmatpush.msrb.mxu2 %v2124_v62  ;;  %v214_v2 = vsub.f32 %v187_v63, %v187_v63  ;;  %v2325_v47 = vand.u32 4294901760, %v2019_v49  ;;  %vm427_vm12 = vcmask 261120   ;;  %v631_v49 = vand.u32 4294901760, %v1890_v15 }
  0x38   : > { %371 = vmatpush.msrb.mxu0 %v2322_v45  ;;  %271 = vmatpush.msra.mxu1 %v270_v35  ;;  %v476_v51 = vand.u32 4294901760, %v475_v53  ;;  %v482_v7 = vand.u32 4294901760, %v481_v44  ;;  %v2324_v35 = vand.u32 4294901760, %v2015_v48  ;;  %v488_v63 = vand.u32 4294901760, %v487_v4 }
  0x39   : > { %446 = vmatpush.msrb.mxu2 %v2130_v59  ;;  %v215_v56 = vand.u32 4294901760, %v214_v2  ;;  %vm858_vm1 = vcmask 785920   ;;  %vm1287_vm7 = vcmask 523520   ;;  %vm1293_vm8 = vcmask 1048320  }
  0x3a   : > { %317 = vmatmul.f32.vlgmr.msra.gmra.mxu2 %v214_v2  ;;  %375 = vmatpush.msrb.mxu0 %v2323_v6  ;;  %v2327_v6 = vand.u32 4294901760, %v2036_v54  ;;  %v661_v54 = vsub.f32 %v1890_v15, %v631_v49 }
  0x3b   : > { %277 = vmatpush.msra.mxu1 %v276_v60  ;;  %477 = vmatpush.msrb.mxu3 %v476_v51  ;;  %v216_v46 = vsub.f32 %v214_v2, %v215_v56  ;;  %v2326_v2 = vand.u32 4294901760, %v2023_v50  ;;  %v637_v60 = vand.u32 4294901760, %v1875_v12 }
  0x3c   : > { %348 = vmatmul.f32.vlgmr.msra.gmra.mxu3 %v215_v56  ;;  %1545 = vmatmul.msk.f32.vlgmr.msra.gmra.mxu1 %vm185_vm10, %v1544_v0 }
  0x3d   : > { %406 = vmatpush.msrb.mxu1 %v1969_v36  ;;  %379 = vmatpush.msrb.mxu0 %v2324_v35  ;;  %v217_v53 = vand.u32 4294901760, %v216_v46  ;;  %v2196_v36 = vld [vmem:[#allocation2] sm:$0xff]  ;;  %v679_v51 = vsub.f32 %v1875_v12, %v637_v60 }
  0x3e   : > { %483 = vmatpush.msrb.mxu3 %v482_v7  ;;  %448 = vmatpush.msrb.mxu2 %v2133_v55  ;;  %v449_v7 = vand.u32 4294901760, %v1903_v20 }
  0x3f   : > { %408 = vmatpush.msrb.mxu1 %v1972_v37  ;;  %383 = vmatpush.msrb.mxu0 %v2325_v47  ;;  %v680_v56 = vand.u32 4294901760, %v679_v51 }
  0x40   : > { %218 = vmatmul.f32.vlgmr.msra.gmra.mxu0 %v217_v53  ;;  %489 = vmatpush.msrb.mxu3 %v488_v63  ;;  %v491_v37 = vsub.f32 %v1903_v20, %v449_v7 }
  0x41   : > { %410 = vmatpush.msrb.mxu1 %v1975_v38  ;;  %387 = vmatpush.msrb.mxu0 %v2326_v2  ;;  %v681_v35 = vsub.f32 %v679_v51, %v680_v56 }
  0x42   : > { %450 = vmatpush.msrb.mxu2 %v449_v7 }
  0x43   : > { %412 = vmatpush.msrb.mxu1 %v1978_v39  ;;  %391 = vmatpush.msrb.mxu0 %v2327_v6  ;;  %v492_v39 = vand.u32 4294901760, %v491_v37  ;;  %v682_v63 = vand.u32 4294901760, %v681_v35 }
  0x44   : > { %515 = vmatpush.msra.mxu2 %v2139_v57  ;;  %v633_v57 = vand.u32 4294901760, %v1885_v14 }
  0x45   : > { %414 = vmatpush.msrb.mxu1 %v1981_v40  ;;  %573 = vmatpush.msra.mxu0 %v474_v1  ;;  %v635_v1 = vand.u32 4294901760, %v1880_v13 }
  0x46   : > { %518 = vmatpush.msra.mxu2 %v2146_v58  ;;  %v662_v58 = vand.u32 4294901760, %v661_v54 }
  0x47   : > { %416 = vmatpush.msrb.mxu1 %v1984_v41  ;;  %577 = vmatpush.msra.mxu0 %v480_v52  ;;  %v493_v41 = vsub.f32 %v491_v37, %v492_v39  ;;  %v673_v52 = vsub.f32 %v1880_v13, %v635_v1 }
  0x48   : > { %1546 = vmatmul.msk.f32.vlgmr.msrb.gmra.mxu0 %vm185_vm10, %v1544_v0  ;;  %521 = vmatpush.msra.mxu2 %v2150_v61  ;;  %v667_v61 = vsub.f32 %v1885_v14, %v633_v57 }
  0x49   : > { %418 = vmatpush.msrb.mxu1 %v1987_v42  ;;  %581 = vmatpush.msra.mxu0 %v486_v5  ;;  %v429_v5 = vsel %vm427_vm12, %v2196_v36, 0  ;;  %v674_v44 = vand.u32 4294901760, %v673_v52 }
  0x4a   : > { %v451_v38 = vand.u32 4294901760, %v429_v5  ;;  %524 = vmatpush.msra.mxu2 %v491_v37 }
  0x4b   : > { %420 = vmatpush.msrb.mxu1 %v1990_v43  ;;  %585 = vmatpush.msra.mxu0 %v492_v39  ;;  %v494_v43 = vand.u32 4294901760, %v493_v41  ;;  %v675_v4 = vsub.f32 %v673_v52, %v674_v44 }
  0x4c   : > { %1547 = vmatmul.msk.f32.vlgmr.msrb.gmra.mxu1 %vm185_vm10, %v1544_v0  ;;  %v452_v40 = vsub.f32 %v429_v5, %v451_v38  ;;  %v663_v0 = vsub.f32 %v661_v54, %v662_v58 }
  0x4d   : > { %604 = vmatpush.msra.mxu1 %v2124_v62  ;;  %495 = vmatpush.msrb.mxu3 %v494_v43  ;;  %v676_v46 = vand.u32 4294901760, %v675_v4 }
  0x4e   : > { %v453_v42 = vand.u32 4294901760, %v452_v40  ;;  %497 = vmatmul.f32.vlgmr.msrb.gmra.mxu3 %v451_v38  ;;  %703 = vmatpush.msrb.mxu0 %v661_v54 }
  0x4f   : > { %606 = vmatpush.msra.mxu1 %v2130_v59  ;;  %544 = vmatpush.msra.mxu3 %v2124_v62  ;;  %v668_v62 = vand.u32 4294901760, %v667_v61 }
  0x50   : > { %587 = vmatmul.f32.vlgmr.msra.gmra.mxu0 %v451_v38  ;;  %v454_v48 = vsub.f32 %v452_v40, %v453_v42 }
  0x51   : > { %608 = vmatpush.msra.mxu1 %v2133_v55  ;;  %546 = vmatpush.msra.mxu3 %v2130_v59  ;;  %v664_v59 = vand.u32 4294901760, %v663_v0  ;;  %v669_v45 = vsub.f32 %v667_v61, %v668_v62 }
  0x52   : > { %v455_v50 = vand.u32 4294901760, %v454_v48  ;;  %706 = vmatpush.msrb.mxu0 %v667_v61 }
  0x53   : > { %610 = vmatpush.msra.mxu1 %v449_v7  ;;  %548 = vmatpush.msra.mxu3 %v2133_v55  ;;  %v670_v55 = vand.u32 4294901760, %v669_v45 }
  0x54   : > { %612 = vmatmul.f32.vlgmr.msra.gmra.mxu1 %v451_v38  ;;  %456 = vmatmul.f32.vlgmr.msrb.gmra.mxu2 %v455_v50 }
  0x55   : > { %732 = vmatpush.msrb.mxu1 %v631_v49  ;;  %632 = vmatpush.msrb.mxu2 %v631_v49 }
  0x56   : > { %550 = vmatpush.msra.mxu3 %v449_v7  ;;  %709 = vmatpush.msrb.mxu0 %v673_v52 }
  0x57   : > { %734 = vmatpush.msrb.mxu1 %v633_v57  ;;  %634 = vmatpush.msrb.mxu2 %v633_v57 }
  0x58   : > { %554 = vmatmul.f32.vlgmr.msra.gmra.mxu3 %v453_v42  ;;  %712 = vmatpush.msrb.mxu0 %v679_v51 }
  0x59   : > { %736 = vmatpush.msrb.mxu1 %v635_v1  ;;  %665 = vmatpush.msrb.mxu3 %v664_v59 }
  0x5a   : > { %636 = vmatpush.msrb.mxu2 %v635_v1 }
  0x5b   : > { %738 = vmatpush.msrb.mxu1 %v637_v60  ;;  %671 = vmatpush.msrb.mxu3 %v670_v55 }
  0x5c   : > { %527 = vmatmul.f32.vlgmr.msra.gmra.mxu2 %v452_v40 }
  0x5d   : > { %677 = vmatpush.msrb.mxu3 %v676_v46  ;;  %638 = vmatpush.msrb.mxu2 %v637_v60 }
  0x5f   : > { %761 = vmatpush.msra.mxu2 %v662_v58  ;;  %683 = vmatpush.msrb.mxu3 %v682_v63 }
  0x61   : > { %792 = vmatpush.msra.mxu3 %v631_v49  ;;  %765 = vmatpush.msra.mxu2 %v668_v62 }
  0x63   : > { %794 = vmatpush.msra.mxu3 %v633_v57  ;;  %769 = vmatpush.msra.mxu2 %v674_v44 }
  0x65   : > { %796 = vmatpush.msra.mxu3 %v635_v1  ;;  %773 = vmatpush.msra.mxu2 %v680_v56 }
  0x67   : > { %798 = vmatpush.msra.mxu3 %v637_v60 }
  0xb9   : > { %v280_v53 = vpop.f32.mrf.mxu1 }
  0xbd   : > { %v219_v47 = vpop.f32.mrf.mxu0  ;;  %v318_v2 = vpop.f32.mrf.mxu2 }
  0xbe   : > { %v281_v6 = vadd.f32 %v280_v53, %v219_v47 }
  0xbf   : > { %v349_v7 = vpop.f32.mrf.mxu3 }
  0xc0   : > { %v319_v37 = vadd.f32 %v318_v2, %v281_v6  ;;  %v805_v6 = vperm.slane %v1943_v28, 0 }
  0xc2   : > { %v350_v5 = vadd.f32 %v349_v7, %v319_v37 }
  0xc5   : > { %v394_v38 = vpop.f32.mrf.mxu0 }
  0xc6   : > { %v395_v39 = vadd.f32 %v394_v38, %v350_v5 }
  0xc9   : > { %v423_v40 = vpop.f32.mrf.mxu1 }
  0xca   : > { %v424_v41 = vadd.f32 %v423_v40, %v395_v39 }
  0xcc   : > { %v617_v42 = vsel %vm427_vm12, %v424_v41, 0 }
  0xcd   : > { %v639_v43 = vand.u32 4294901760, %v617_v42  ;;  %v588_v60 = vpop.f32.mrf.mxu0 }
  0xcf   : > { %v640_v48 = vsub.f32 %v617_v42, %v639_v43  ;;  %685 = vmatmul.f32.vlgmr.msrb.gmra.mxu3 %v639_v43 }
  0xd1   : > { %715 = vmatmul.f32.vlgmr.msrb.gmra.mxu0 %v640_v48  ;;  %v641_v49 = vand.u32 4294901760, %v640_v48  ;;  %v498_v58 = vpop.f32.mrf.mxu3  ;;  %v613_v45 = vpop.f32.mrf.mxu1 }
  0xd3   : > { %742 = vmatmul.f32.vlgmr.msrb.gmra.mxu1 %v641_v49  ;;  %v642_v50 = vsub.f32 %v640_v48, %v641_v49 }
  0xd5   : > { %v643_v54 = vand.u32 4294901760, %v642_v50 }
  0xd7   : > { %644 = vmatmul.f32.vlgmr.msrb.gmra.mxu2 %v643_v54  ;;  %800 = vmatmul.f32.vlgmr.msra.gmra.mxu3 %v639_v43  ;;  %v457_v57 = vpop.f32.mrf.mxu2 }
  0xd8   : > { %v499_v61 = vadd.f32 %v498_v58, %v457_v57 }
  0xdb   : > { %v555_v62 = vpop.f32.mrf.mxu3 }
  0xdf   : > { %775 = vmatmul.f32.vlgmr.msra.gmra.mxu2 %v639_v43  ;;  %v528_v1 = vpop.f32.mrf.mxu2 }
  0xe0   : > { %v529_v0 = vadd.f32 %v528_v1, %v499_v61 }
  0xe2   : > { %v556_v52 = vadd.f32 %v555_v62, %v529_v0 }
  0xe4   : > { %v589_v59 = vadd.f32 %v588_v60, %v556_v52 }
  0xe6   : > { %v614_v44 = vadd.f32 %v613_v45, %v589_v59 }
 0x14e   : > { %v716_v46 = vpop.f32.mrf.mxu0 }
 0x150   : > { %v743_v63 = vpop.f32.mrf.mxu1 }
 0x152   : > { %v686_v51 = vpop.f32.mrf.mxu3 }
 0x15a   : > { %v645_v55 = vpop.f32.mrf.mxu2  ;;  %v801_v7 = vpop.f32.mrf.mxu3 }
 0x15b   : > { %v646_v4 = vadd.f32 %v645_v55, %v614_v44 }
 0x15d   : > { %v687_v56 = vadd.f32 %v686_v51, %v646_v4 }
 0x15f   : > { %v717_v35 = vadd.f32 %v716_v46, %v687_v56 }
 0x161   : > { %v744_v53 = vadd.f32 %v743_v63, %v717_v35  ;;  %v878_v35 = vand.u32 4294901760, %v1938_v27  ;;  %v880_v63 = vand.u32 4294901760, %v1933_v26 }
 0x162   : > { %v776_v47 = vpop.f32.mrf.mxu2 }
 0x163   : > { %v777_v2 = vadd.f32 %v776_v47, %v744_v53  ;;  %v908_v53 = vsub.f32 %v1938_v27, %v878_v35  ;;  %v914_v47 = vsub.f32 %v1933_v26, %v880_v63  ;;  %979 = vmatpush.msrb.mxu3 %v878_v35  ;;  %879 = vmatpush.msra.mxu0 %v878_v35 }
 0x165   : > { %v802_v37 = vadd.f32 %v801_v7, %v777_v2  ;;  %v909_v2 = vand.u32 4294901760, %v908_v53  ;;  %950 = vmatpush.msrb.mxu2 %v908_v53  ;;  %981 = vmatpush.msrb.mxu3 %v880_v63 }
 0x166   : > { %881 = vmatpush.msra.mxu0 %v880_v63 }
 0x167   : > { %v807_v5 = vadd.f32 %v805_v6, %v802_v37  ;;  %v915_v6 = vand.u32 4294901760, %v914_v47  ;;  %v910_v7 = vsub.f32 %v908_v53, %v909_v2  ;;  %953 = vmatpush.msrb.mxu2 %v914_v47 }
 0x169   : > { %v1548_v38 = vmul.f32 -1.442695, %v807_v5  ;;  %v916_v37 = vsub.f32 %v914_v47, %v915_v6 }
 0x16b   : > { %1571 = vpow2.f32 %v1548_v38  ;;  %v917_v38 = vand.u32 4294901760, %v916_v37 }
 0x171   : > { %v1572_v39 = vpop.eup %1571 }
 0x172   : > { %v812_v40 = vadd.f32 1.0, %v1572_v39  ;;  %v882_v39 = vand.u32 4294901760, %v1928_v25 }
 0x174   : > { %1573 = vrcp.f32 %v812_v40  ;;  %v824_v48 = vand.u32 2147483648, %v812_v40  ;;  %v822_v50 = vand.u32 2147483647, %v812_v40  ;;  %vm818_vm14 = vweird.f32 %v812_v40  ;;  %983 = vmatpush.msrb.mxu3 %v882_v39  ;;  %883 = vmatpush.msra.mxu0 %v882_v39 }
 0x175   : > { %1575 = vtanh.f32 %v807_v5  ;;  %v911_v5 = vand.u32 4294901760, %v910_v7 }
 0x176   : > { %v825_v57 = vor.u32 1.1754944e-38, %v824_v48  ;;  %vm823_vm0 = vcmp.eq.f32.partialorder %v822_v50, 8.507059e+37 }
 0x177   : > { %912 = vmatpush.msra.mxu1 %v911_v5 }
 0x179   : > { %918 = vmatpush.msra.mxu1 %v917_v38 }
 0x17a   : > { %v1574_v41 = vpop.eup %1573 }
 0x17b   : > { %v814_v42 = vmul.f32 %v1574_v41, %v812_v40  ;;  %vm819_vm13 = vweird.f32 %v1574_v41  ;;  %v1576_v61 = vpop.eup %1575  ;;  %v920_v40 = vsub.f32 %v1928_v25, %v882_v39 }
 0x17c   : > { %vm820_vm15 = vmor %vm818_vm14, %vm819_vm13 }
 0x17d   : > { %v815_v43 = vsub.f32 1.0, %v814_v42  ;;  %v921_v42 = vand.u32 4294901760, %v920_v40  ;;  %956 = vmatpush.msrb.mxu2 %v920_v40 }
 0x17f   : > { %v816_v49 = vmul.f32 %v1574_v41, %v815_v43  ;;  %v922_v48 = vsub.f32 %v920_v40, %v921_v42 }
 0x181   : > { %v817_v54 = vadd.f32 %v1574_v41, %v816_v49  ;;  %v923_v50 = vand.u32 4294901760, %v922_v48 }
 0x183   : > { %v821_v58 = vsel %vm820_vm15, %v1574_v41, %v817_v54  ;;  %v884_v41 = vand.u32 4294901760, %v1923_v24  ;;  %924 = vmatpush.msra.mxu1 %v923_v50 }
 0x184   : > { %v826_v1 = vsel %vm823_vm0, %v825_v57, %v821_v58  ;;  %v1065_v57 = vand.u32 4294901760, %v1898_v19 }
 0x185   : > { %v828_v0 = vsel %vm1828_vm2, %v1576_v61, %v826_v1  ;;  %v926_v43 = vsub.f32 %v1923_v24, %v884_v41  ;;  %985 = vmatpush.msrb.mxu3 %v884_v41  ;;  %885 = vmatpush.msra.mxu0 %v884_v41  ;;  %v1067_v61 = vand.u32 4294901760, %v1896_v18 }
 0x186   : > { %834 = vrot.lane.b32.xlu0 %v828_v0, %s1744_s22  ;;  %v1095_v1 = vsub.f32 %v1898_v19, %v1065_v57 }
 0x187   : > { %v927_v49 = vand.u32 4294901760, %v926_v43  ;;  %959 = vmatpush.msrb.mxu2 %v926_v43  ;;  %1008 = vmatpush.msrb.mxu0 %v909_v2 }
 0x189   : > { %v928_v54 = vsub.f32 %v926_v43, %v927_v49  ;;  %1012 = vmatpush.msrb.mxu0 %v915_v6  ;;  %1066 = vmatpush.msra.mxu2 %v1065_v57 }
 0x18b   : > { %v929_v58 = vand.u32 4294901760, %v928_v54  ;;  %1016 = vmatpush.msrb.mxu0 %v921_v42  ;;  %1068 = vmatpush.msra.mxu2 %v1067_v61 }
 0x18d   : > { %930 = vmatpush.msra.mxu1 %v929_v58  ;;  %1020 = vmatpush.msrb.mxu0 %v927_v49 }
 0x18e   : > { %829 = vrot.lane.b32.xlu0 %v2196_v36, %s1745_s0 }
 0x18f   : > { %1039 = vmatpush.msrb.mxu1 %v878_v35 }
 0x191   : > { %1041 = vmatpush.msrb.mxu1 %v880_v63 }
 0x193   : > { %1043 = vmatpush.msrb.mxu1 %v882_v39 }
 0x195   : > { %1045 = vmatpush.msrb.mxu1 %v884_v41 }
 0x1f8   : > { %v835_v62 = vpop.permute.xlu0 %834 }
 0x1f9   : > { %v837_v52 = vmul.f32 %v835_v62, %v828_v0  ;;  %v1069_v62 = vand.u32 4294901760, %v1894_v17 }
 0x1fb   : > { %839 = vrot.lane.b32.xlu1 %v837_v52, %s1746_s23  ;;  %v1101_v52 = vsub.f32 %v1896_v18, %v1067_v61  ;;  %1070 = vmatpush.msra.mxu2 %v1069_v62 }
 0x200   : > { %v830_v60 = vpop.permute.xlu0 %829 }
 0x201   : > { %v832_v59 = vmul.f32 %v830_v60, %v828_v0 }
 0x26d   : > { %v840_v45 = vpop.permute.xlu1 %839 }
 0x26e   : > { %v842_v44 = vadd.f32 %v840_v45, %v832_v59  ;;  %v1102_v59 = vand.u32 4294901760, %v1101_v52  ;;  %v1071_v45 = vand.u32 4294901760, %v1892_v16 }
 0x270   : > { %1577 = vtanh.f32 %v842_v44  ;;  %1072 = vmatpush.msra.mxu2 %v1071_v45 }
 0x276   : > { %v1578_v51 = vpop.eup %1577 }
 0x277   : > { %845 = vrot.lane.b32.xlu1 %v1578_v51, %s1744_s22 }
 0x2e9   : > { %v846_v55 = vpop.permute.xlu1 %845 }
 0x2ea   : > { %v848_v4 = vmul.f32 %v846_v55, %v828_v0  ;;  %v1096_v0 = vand.u32 4294901760, %v1095_v1  ;;  %v1103_v55 = vsub.f32 %v1101_v52, %v1102_v59 }
 0x2ec   : > { %850 = vrot.lane.b32.xlu2 %v848_v4, %s1746_s23  ;;  %v1097_v60 = vsub.f32 %v1095_v1, %v1096_v0 }
 0x2ee   : > { %v1098_v51 = vand.u32 4294901760, %v1097_v60 }
 0x2f0   : > { %1099 = vmatpush.msra.mxu3 %v1098_v51 }
 0x2f4   : > { %855 = vrot.lane.b32.xlu2 %v842_v44, %s1746_s23  ;;  %v1107_v44 = vsub.f32 %v1894_v17, %v1069_v62 }
 0x2f6   : > { %v1108_v4 = vand.u32 4294901760, %v1107_v44 }
 0x2f8   : > { %v1109_v53 = vsub.f32 %v1107_v44, %v1108_v4 }
 0x2fa   : > { %v1110_v47 = vand.u32 4294901760, %v1109_v53 }
 0x346   : > { %v2225_v36 = vpop.permute.xlu2 %850 }
 0x347   : > { %853 = vst.msk [vmem:[#allocation2] sm:$0xff] %vm427_vm12, %v2225_v36  ;;  %v1051_v63 = vsel %vm427_vm12, %v2225_v36, 0 }
 0x348   : > { %v1073_v7 = vand.u32 4294901760, %v1051_v63 }
 0x34a   : > { %v1074_v37 = vsub.f32 %v1051_v63, %v1073_v7 }
 0x34c   : > { %v1075_v40 = vand.u32 4294901760, %v1074_v37 }
 0x34e   : > { %v856_v56 = vpop.permute.xlu2 %855  ;;  %v1076_v43 = vsub.f32 %v1074_v37, %v1075_v40 }
 0x34f   : > { %859 = vst.msk [vmem:[#allocation2] sm:$0xff] %vm858_vm1, %v856_v56  ;;  %v1113_v56 = vsub.f32 %v1892_v16, %v1071_v45 }
 0x350   : > { %v1077_v49 = vand.u32 4294901760, %v1076_v43 }
 0x351   : > { %v1114_v35 = vand.u32 4294901760, %v1113_v56 }
 0x353   : > { %v1115_v2 = vsub.f32 %v1113_v56, %v1114_v35 }
 0x355   : > { %v1116_v6 = vand.u32 4294901760, %v1115_v2  ;;  %v1239_v2 = vperm.slane %v1948_v29, 0 }
 0x356   : > { %v860_v46 = vld [vmem:[#allocation2] sm:$0xff] }
 0x357   : > { %1263 = vrot.lane.b32.xlu2 %v860_v46, %s1744_s22  ;;  %862 = vrot.lane.b32.xlu0 %v860_v46, %s1745_s0  ;;  %v1104_v46 = vand.u32 4294901760, %v1103_v55 }
 0x359   : > { %1105 = vmatpush.msra.mxu3 %v1104_v46 }
 0x35b   : > { %1111 = vmatpush.msra.mxu3 %v1110_v47 }
 0x35d   : > { %1117 = vmatpush.msra.mxu3 %v1116_v6 }
 0x3c9   : > { %v863_v5 = vpop.permute.xlu0 %862 }
 0x3ca   : > { %v864_v38 = vsel %vm427_vm12, %v863_v5, 0 }
 0x3cb   : > { %v886_v39 = vand.u32 4294901760, %v864_v38 }
 0x3cd   : > { %v887_v42 = vsub.f32 %v864_v38, %v886_v39  ;;  %932 = vmatmul.f32.vlgmr.msra.gmra.mxu1 %v886_v39 }
 0x3ce   : > { %1166 = vmatpush.msra.mxu1 %v1065_v57 }
 0x3cf   : > { %v888_v41 = vand.u32 4294901760, %v887_v42  ;;  %962 = vmatmul.f32.vlgmr.msrb.gmra.mxu2 %v887_v42 }
 0x3d0   : > { %1168 = vmatpush.msra.mxu1 %v1067_v61  ;;  %1195 = vmatpush.msrb.mxu2 %v1096_v0 }
 0x3d1   : > { %v889_v48 = vsub.f32 %v887_v42, %v888_v41  ;;  %989 = vmatmul.f32.vlgmr.msrb.gmra.mxu3 %v888_v41 }
 0x3d2   : > { %1170 = vmatpush.msra.mxu1 %v1069_v62  ;;  %1199 = vmatpush.msrb.mxu2 %v1102_v59 }
 0x3d3   : > { %v890_v36 = vand.u32 4294901760, %v889_v48  ;;  %1226 = vmatpush.msrb.mxu3 %v1065_v57 }
 0x3d4   : > { %1172 = vmatpush.msra.mxu1 %v1071_v45  ;;  %1203 = vmatpush.msrb.mxu2 %v1108_v4 }
 0x3d5   : > { %891 = vmatmul.f32.vlgmr.msra.gmra.mxu0 %v890_v36  ;;  %1047 = vmatmul.f32.vlgmr.msrb.gmra.mxu1 %v886_v39 }
 0x3d6   : > { %1228 = vmatpush.msrb.mxu3 %v1067_v61  ;;  %1137 = vmatpush.msra.mxu0 %v1095_v1 }
 0x3d7   : > { %1078 = vmatmul.f32.vlgmr.msra.gmra.mxu2 %v1077_v49 }
 0x3d8   : > { %1207 = vmatpush.msrb.mxu2 %v1114_v35  ;;  %1230 = vmatpush.msrb.mxu3 %v1069_v62 }
 0x3d9   : > { %1119 = vmatmul.f32.vlgmr.msra.gmra.mxu3 %v1073_v7  ;;  %1140 = vmatpush.msra.mxu0 %v1101_v52 }
 0x3da   : > { %1232 = vmatpush.msrb.mxu3 %v1071_v45 }
 0x3db   : > { %1143 = vmatpush.msra.mxu0 %v1107_v44 }
 0x3dd   : > { %1022 = vmatmul.f32.vlgmr.msrb.gmra.mxu0 %v886_v39  ;;  %1176 = vmatmul.f32.vlgmr.msra.gmra.mxu1 %v1075_v40 }
 0x3de   : > { %1146 = vmatpush.msra.mxu0 %v1113_v56 }
 0x3df   : > { %1209 = vmatmul.f32.vlgmr.msrb.gmra.mxu2 %v1073_v7 }
 0x3e1   : > { %1234 = vmatmul.f32.vlgmr.msrb.gmra.mxu3 %v1073_v7 }
 0x3e5   : > { %1149 = vmatmul.f32.vlgmr.msra.gmra.mxu0 %v1074_v37 }
 0x44a   : > { %v933_v50 = vpop.f32.mrf.mxu1 }
 0x452   : > { %v892_v54 = vpop.f32.mrf.mxu0  ;;  %v963_v57 = vpop.f32.mrf.mxu2 }
 0x453   : > { %v934_v58 = vadd.f32 %v933_v50, %v892_v54  ;;  %v1048_v60 = vpop.f32.mrf.mxu1 }
 0x454   : > { %v990_v0 = vpop.f32.mrf.mxu3 }
 0x455   : > { %v964_v61 = vadd.f32 %v963_v57, %v934_v58 }
 0x457   : > { %v991_v1 = vadd.f32 %v990_v0, %v964_v61 }
 0x45a   : > { %v1023_v59 = vpop.f32.mrf.mxu0  ;;  %v1079_v51 = vpop.f32.mrf.mxu2 }
 0x45b   : > { %v1024_v62 = vadd.f32 %v1023_v59, %v991_v1  ;;  %v1177_v46 = vpop.f32.mrf.mxu1  ;;  %v1264_v1 = vpop.permute.xlu2 %1263 }
 0x45c   : > { %v1120_v45 = vpop.f32.mrf.mxu3 }
 0x45d   : > { %v1049_v52 = vadd.f32 %v1048_v60, %v1024_v62 }
 0x45f   : > { %v1080_v44 = vadd.f32 %v1079_v51, %v1049_v52  ;;  %v1314_v52 = vand.u32 4294901760, %v1956_v33 }
 0x461   : > { %v1121_v55 = vadd.f32 %v1120_v45, %v1080_v44  ;;  %v1316_v45 = vand.u32 4294901760, %v1954_v32  ;;  %v1344_v44 = vsub.f32 %v1956_v33, %v1314_v52  ;;  %1415 = vmatpush.msra.mxu3 %v1314_v52  ;;  %1315 = vmatpush.msrb.mxu0 %v1314_v52 }
 0x462   : > { %v1150_v4 = vpop.f32.mrf.mxu0  ;;  %v1210_v35 = vpop.f32.mrf.mxu2 }
 0x463   : > { %v1151_v56 = vadd.f32 %v1150_v4, %v1121_v55  ;;  %v1350_v55 = vsub.f32 %v1954_v32, %v1316_v45  ;;  %v1345_v4 = vand.u32 4294901760, %v1344_v44  ;;  %1386 = vmatpush.msra.mxu2 %v1344_v44  ;;  %1417 = vmatpush.msra.mxu3 %v1316_v45 }
 0x464   : > { %v1235_v6 = vpop.f32.mrf.mxu3  ;;  %1317 = vmatpush.msrb.mxu0 %v1316_v45 }
 0x465   : > { %v1178_v53 = vadd.f32 %v1177_v46, %v1151_v56  ;;  %v1351_v56 = vand.u32 4294901760, %v1350_v55  ;;  %v1346_v46 = vsub.f32 %v1344_v44, %v1345_v4  ;;  %1389 = vmatpush.msra.mxu2 %v1350_v55 }
 0x467   : > { %v1211_v47 = vadd.f32 %v1210_v35, %v1178_v53  ;;  %v1352_v53 = vsub.f32 %v1350_v55, %v1351_v56  ;;  %v1347_v35 = vand.u32 4294901760, %v1346_v46 }
 0x469   : > { %v1236_v63 = vadd.f32 %v1235_v6, %v1211_v47  ;;  %v1353_v47 = vand.u32 4294901760, %v1352_v53  ;;  %1348 = vmatpush.msrb.mxu1 %v1347_v35 }
 0x46b   : > { %v1241_v7 = vadd.f32 %v1239_v2, %v1236_v63  ;;  %1354 = vmatpush.msrb.mxu1 %v1353_v47  ;;  %v1318_v63 = vand.u32 4294901760, %v1952_v31 }
 0x46d   : > { %v1549_v37 = vmul.f32 -1.442695, %v1241_v7  ;;  %1419 = vmatpush.msra.mxu3 %v1318_v63  ;;  %1319 = vmatpush.msrb.mxu0 %v1318_v63 }
 0x46f   : > { %1579 = vpow2.f32 %v1549_v37  ;;  %v1320_v37 = vand.u32 4294901760, %v1950_v30 }
 0x471   : > { %1421 = vmatpush.msra.mxu3 %v1320_v37  ;;  %1321 = vmatpush.msrb.mxu0 %v1320_v37 }
 0x473   : > { %1444 = vmatpush.msra.mxu0 %v1345_v4 }
 0x475   : > { %v1580_v5 = vpop.eup %1579  ;;  %1448 = vmatpush.msra.mxu0 %v1351_v56 }
 0x476   : > { %v1246_v38 = vadd.f32 1.0, %v1580_v5 }
 0x478   : > { %1581 = vrcp.f32 %v1246_v38  ;;  %v1258_v41 = vand.u32 2147483648, %v1246_v38  ;;  %v1256_v48 = vand.u32 2147483647, %v1246_v38  ;;  %vm1252_vm4 = vweird.f32 %v1246_v38 }
 0x479   : > { %1583 = vtanh.f32 %v1241_v7  ;;  %v1356_v7 = vsub.f32 %v1952_v31, %v1318_v63 }
 0x47a   : > { %v1259_v49 = vor.u32 1.1754944e-38, %v1258_v41  ;;  %vm1257_vm6 = vcmp.eq.f32.partialorder %v1256_v48, 8.507059e+37 }
 0x47b   : > { %v1357_v5 = vand.u32 4294901760, %v1356_v7  ;;  %1392 = vmatpush.msra.mxu2 %v1356_v7 }
 0x47d   : > { %1452 = vmatpush.msra.mxu0 %v1357_v5 }
 0x47e   : > { %v1582_v39 = vpop.eup %1581 }
 0x47f   : > { %v1248_v40 = vmul.f32 %v1582_v39, %v1246_v38  ;;  %vm1253_vm3 = vweird.f32 %v1582_v39  ;;  %v1584_v54 = vpop.eup %1583  ;;  %v1362_v38 = vsub.f32 %v1950_v30, %v1320_v37 }
 0x480   : > { %vm1254_vm5 = vmor %vm1252_vm4, %vm1253_vm3 }
 0x481   : > { %v1249_v42 = vsub.f32 1.0, %v1248_v40  ;;  %v1363_v40 = vand.u32 4294901760, %v1362_v38  ;;  %1395 = vmatpush.msra.mxu2 %v1362_v38 }
 0x483   : > { %v1250_v43 = vmul.f32 %v1582_v39, %v1249_v42  ;;  %v1364_v41 = vsub.f32 %v1362_v38, %v1363_v40  ;;  %1456 = vmatpush.msra.mxu0 %v1363_v40 }
 0x485   : > { %v1251_v36 = vadd.f32 %v1582_v39, %v1250_v43  ;;  %v1365_v43 = vand.u32 4294901760, %v1364_v41 }
 0x487   : > { %v1255_v50 = vsel %vm1254_vm5, %v1582_v39, %v1251_v36  ;;  %v1358_v39 = vsub.f32 %v1356_v7, %v1357_v5 }
 0x488   : > { %v1260_v57 = vsel %vm1257_vm6, %v1259_v49, %v1255_v50 }
 0x489   : > { %v1262_v58 = vsel %vm1828_vm2, %v1584_v54, %v1260_v57  ;;  %v1359_v42 = vand.u32 4294901760, %v1358_v39 }
 0x48a   : > { %1268 = vrot.lane.b32.xlu1 %v1262_v58, %s1744_s22  ;;  %v1266_v60 = vmul.f32 %v1264_v1, %v1262_v58  ;;  %v1296_v1 = vperm.slane %v1961_v34, 0 }
 0x48b   : > { %1360 = vmatpush.msrb.mxu1 %v1359_v42 }
 0x48d   : > { %1366 = vmatpush.msrb.mxu1 %v1365_v43 }
 0x48f   : > { %1475 = vmatpush.msra.mxu1 %v1314_v52 }
 0x491   : > { %1477 = vmatpush.msra.mxu1 %v1316_v45 }
 0x493   : > { %1479 = vmatpush.msra.mxu1 %v1318_v63 }
 0x495   : > { %1481 = vmatpush.msra.mxu1 %v1320_v37 }
 0x4fc   : > { %v1269_v0 = vpop.permute.xlu1 %1268 }
 0x4fd   : > { %v1271_v61 = vmul.f32 %v1269_v0, %v1262_v58 }
 0x4ff   : > { %1273 = vrot.lane.b32.xlu0 %v1271_v61, %s1746_s23 }
 0x571   : > { %v1274_v59 = vpop.permute.xlu0 %1273 }
 0x572   : > { %v1276_v62 = vadd.f32 %v1274_v59, %v1266_v60 }
 0x574   : > { %1585 = vtanh.f32 %v1276_v62 }
 0x57a   : > { %v1586_v51 = vpop.eup %1585 }
 0x57b   : > { %1279 = vrot.lane.b32.xlu1 %v1586_v51, %s1744_s22 }
 0x583   : > { %1290 = vrot.lane.b32.xlu1 %v1276_v62, %s1744_s22 }
 0x5ed   : > { %v1280_v2 = vpop.permute.xlu1 %1279 }
 0x5ee   : > { %v1282_v6 = vmul.f32 %v1280_v2, %v1262_v58 }
 0x5f0   : > { %1284 = vrot.lane.b32.xlu0 %v1282_v6, %s1744_s22  ;;  %1298 = vrot.lane.b32.xlu2 %v1282_v6, %s1746_s23 }
 0x5f5   : > { %v1291_v61 = vpop.permute.xlu1 %1290 }
 0x64a   : > { %v1299_v48 = vpop.permute.xlu2 %1298 }
 0x64b   : > { %v1300_v36 = vsel %vm427_vm12, %v1299_v48, 0 }
 0x64c   : > { %v1322_v49 = vand.u32 4294901760, %v1300_v36 }
 0x64e   : > { %v1323_v50 = vsub.f32 %v1300_v36, %v1322_v49  ;;  %1368 = vmatmul.f32.vlgmr.msrb.gmra.mxu1 %v1322_v49 }
 0x650   : > { %v1324_v54 = vand.u32 4294901760, %v1323_v50  ;;  %1398 = vmatmul.f32.vlgmr.msra.gmra.mxu2 %v1323_v50 }
 0x652   : > { %v1325_v57 = vsub.f32 %v1323_v50, %v1324_v54  ;;  %1425 = vmatmul.f32.vlgmr.msra.gmra.mxu3 %v1324_v54 }
 0x654   : > { %v1326_v58 = vand.u32 4294901760, %v1325_v57 }
 0x656   : > { %1327 = vmatmul.f32.vlgmr.msrb.gmra.mxu0 %v1326_v58  ;;  %1483 = vmatmul.f32.vlgmr.msra.gmra.mxu1 %v1322_v49 }
 0x65e   : > { %1458 = vmatmul.f32.vlgmr.msra.gmra.mxu0 %v1322_v49 }
 0x662   : > { %v1285_v0 = vpop.permute.xlu0 %1284 }
 0x663   : > { %1288 = vst.msk [vmem:[#allocation2] sm:$0xff] %vm1287_vm7, %v1285_v0 }
 0x664   : > { %1294 = vst.msk [vmem:[#allocation2] sm:$0xff] %vm1293_vm8, %v1291_v61 }
 0x66b   :  { %v1493_v35 = vld [vmem:[#allocation2] sm:$0xff] (%p139_p0) }
 0x66c   :  { %1494 = vst [vmem:[#allocation12] sm:$0xff] (%p139_p0), %v1493_v35 }
 0x66d   :  { %1518 = dma.vmem_to_hbm [thread:$0]  (%p139_p0), %s1514_s6, 128, %s1516_s11, [#allocation13]  }
 0x6cb   : > { %v1369_v60 = vpop.f32.mrf.mxu1 }
 0x6d3   : > { %v1328_v59 = vpop.f32.mrf.mxu0  ;;  %v1399_v52 = vpop.f32.mrf.mxu2 }
 0x6d4   : > { %v1329_v62 = vadd.f32 %v1328_v59, %v1296_v1  ;;  %v1484_v46 = vpop.f32.mrf.mxu1 }
 0x6d5   : > { %v1426_v44 = vpop.f32.mrf.mxu3 }
 0x6d6   : > { %v1370_v51 = vadd.f32 %v1369_v60, %v1329_v62 }
 0x6d8   : > { %v1400_v45 = vadd.f32 %v1399_v52, %v1370_v51 }
 0x6da   : > { %v1427_v55 = vadd.f32 %v1426_v44, %v1400_v45 }
 0x6db   : > { %v1459_v4 = vpop.f32.mrf.mxu0 }
 0x6dc   : > { %v1460_v56 = vadd.f32 %v1459_v4, %v1427_v55  ;;  %142 = sbr.rel (!%p139_p0) target bundleno = 34 (0x22), region = 90 }
 0x6de   : > { %v1485_v53 = vadd.f32 %v1484_v46, %v1460_v56 }
 0x6e0   : > { %1489 = vst [vmem:[%s1488_s26] sm:$0xff] %v1485_v53 }
 0x6e1   :  { %1507 = dma.vmem_to_hbm [thread:$0]  %s1500_s5, 1024, %s1502_s4, [#allocation7], %s1739_s24, %s1739_s24, %s1740_s25  }
 0x6e2   :  { %1729 = dma.done.wait [#allocation7], 1024  }
 0x6e3   :  { %1730 = vsyncadd [#allocation7], 4294966272 }
 0x6e4   :  { %1731 = dma.done.wait [#allocation13], 128  }
 0x6e5   :  { %1732 = vsyncadd [#allocation13], 4294967168 }
 0x6e6   :  { %1527 = vsyncpa [#allocation6], 1 }
 0x6e7   :  { %1528 = vsyncpa [#allocation9], 1 }
 0x6e8   :  { %1529 = vsyncpa [#allocation7], 1 }
 0x6e9   :  { %1530 = vsyncpa [#allocation13], 1 }

</bundles_post_ra>
